<compile_context>
chip_gen: v7x
topology: tpu7x:2x2x1
jax: 0.10.0
libtpu: 0.0.40
codegen_flags: <defaults>
</compile_context>

<pallas_src>
import jax
import jax.numpy as jnp
from jax import lax
from jax.experimental import pallas as pl
from jax.experimental.pallas import tpu as pltpu

# ---- problem constants (from the PyTorch module) ----
G = 26            # groups
CG = 8            # channels per group (in == out)
C = G * CG        # 208
H = W = 14
HW = H * W        # 196 valid output positions
K = 9             # 3x3 taps
EPS = 1e-5

# ---- padded / aligned kernel-side shapes ----
HALF = 128                 # channels per kernel half (group boundary: 16*8 = 128)
NHALF = 2                  # 2 halves -> 256 padded channels
CPAD = NHALF * HALF        # 256
KROWS = K * HALF           # 1152 contraction rows per half (9 taps x 128 ch)
MOUT = 256                 # output columns: 196 valid positions padded to 2x128


def _gconv_bn_kernel(x_ref, w_ref, mask_ref, g_ref, b_ref, o_ref):
    # Per channel-half (grid step):
    #   x_ref   : (KROWS, MOUT)  stacked im2col taps for this half (lane-dense)
    #   w_ref   : (HALF, KROWS)  diagonal-quadrant weights, taps along contraction
    #   mask_ref: (1, MOUT)      valid-position mask, pre-scaled by 1/196
    #   g_ref   : (HALF, 1)      BN gamma,  b_ref: (HALF, 1) BN beta
    #   o_ref   : (HALF, MOUT)   normalized output (channels x flat-spatial)
    acc = jnp.dot(w_ref[...], x_ref[...],
                  preferred_element_type=jnp.float32)        # (HALF, MOUT)

    # BatchNorm2d (training mode): one-pass moments over the 196 valid columns.
    mnorm = mask_ref[...]                                    # (1, MOUT) valid/196
    am = acc * mnorm
    mean = jnp.sum(am, axis=1, keepdims=True)                # (HALF, 1)  E[x]
    ex2 = jnp.sum(am * acc, axis=1, keepdims=True)           # (HALF, 1)  E[x^2]
    var = ex2 - mean * mean                                  # biased variance
    inv = lax.rsqrt(var + EPS)
    scale = inv * g_ref[...]
    shift = b_ref[...] - mean * scale
    o_ref[...] = acc * scale + shift


@jax.jit
def relu_groupconv_bn(x, w, gamma, beta):
    """x: (1,208,14,14) NCHW f32; w: (208,8,3,3) OIHW; gamma/beta: (208,)."""
    n, c, h, wd = x.shape
    assert n == 1 and c == C and h == H and wd == W

    # ---- prologue glue (fused XLA): ReLU once, pad, im2col per half ----
    xr = jnp.maximum(x[0], 0.0)                               # (208, 14, 14)
    xp = jnp.pad(xr, ((0, CPAD - C), (1, 1), (1, 1)))         # (256, 16, 16)

    halves = []
    for hh in range(NHALF):
        xh = xp[hh * HALF:(hh + 1) * HALF]                    # (128, 16, 16)
        taps = [xh[:, dy:dy + H, dx:dx + W].reshape(HALF, HW)
                for dy in range(3) for dx in range(3)]        # 9 x (128, 196)
        halves.append(jnp.concatenate(taps, axis=0))          # (1152, 196)
    xcol = jnp.concatenate(halves, axis=0)                    # (2304, 196)
    xcol = jnp.pad(xcol, ((0, 0), (0, MOUT - HW)))            # (2304, 256)

    # Block-diagonal weight; keep only the diagonal 128x128 quadrants and lay
    # the 9 taps along the contraction axis -> (2*128, 9*128).
    wg = w.reshape(G, CG, CG, 3, 3)                           # (g, o, i, kh, kw)
    wg = jnp.transpose(wg, (3, 4, 0, 1, 2)).reshape(K, G, CG, CG)
    eye = jnp.eye(G, dtype=w.dtype)
    wbd = (wg[:, :, :, None, :] * eye[None, :, None, :, None]).reshape(K, C, C)
    wbd = jnp.pad(wbd, ((0, 0), (0, CPAD - C), (0, CPAD - C)))  # (9, 256, 256)
    w_halves = []
    for hh in range(NHALF):
        quads = [wbd[k, hh * HALF:(hh + 1) * HALF, hh * HALF:(hh + 1) * HALF]
                 for k in range(K)]                           # 9 x (128, 128)
        w_halves.append(jnp.concatenate(quads, axis=1))       # (128, 1152)
    wfull = jnp.concatenate(w_halves, axis=0)                 # (256, 1152)

    # Valid-position mask (constant-folded by XLA), pre-scaled by 1/196.
    mask = ((jnp.arange(MOUT) < HW).astype(jnp.float32) / float(HW)).reshape(1, MOUT)

    # gamma/beta zero-padded for channels 208..255 (required: keeps padded rows
    # at exactly 0 despite their var=0 -> rsqrt(eps) normalization).
    gamma_p = jnp.pad(gamma, (0, CPAD - C)).reshape(CPAD, 1)
    beta_p = jnp.pad(beta, (0, CPAD - C)).reshape(CPAD, 1)

    out = pl.pallas_call(
        _gconv_bn_kernel,
        out_shape=jax.ShapeDtypeStruct((CPAD, MOUT), jnp.float32),
        grid=(NHALF,),
        in_specs=[
            pl.BlockSpec((KROWS, MOUT), lambda hh: (hh, 0)),   # im2col half
            pl.BlockSpec((HALF, KROWS), lambda hh: (hh, 0)),   # weight half
            pl.BlockSpec((1, MOUT), lambda hh: (0, 0)),        # mask (shared)
            pl.BlockSpec((HALF, 1), lambda hh: (hh, 0)),       # gamma half
            pl.BlockSpec((HALF, 1), lambda hh: (hh, 0)),       # beta half
        ],
        out_specs=pl.BlockSpec((HALF, MOUT), lambda hh: (hh, 0)),
        compiler_params=pltpu.CompilerParams(
            dimension_semantics=("parallel",),
            vmem_limit_bytes=32 * 1024 * 1024,
        ),
    )(xcol, wfull, mask, gamma_p, beta_p)

    # ---- epilogue glue: slice valid channels/positions, back to NCHW ----
    y = out[:C, :HW].reshape(C, H, W)
    return y[None]


def reference(x, w, gamma, beta):
    """Pure-JAX reference: ReLU -> grouped conv -> BatchNorm (training mode)."""
    xr = jnp.maximum(x, 0.0)
    y = lax.conv_general_dilated(
        xr, w, window_strides=(1, 1), padding=((1, 1), (1, 1)),
        dimension_numbers=("NCHW", "OIHW", "NCHW"), feature_group_count=G)
    mean = jnp.mean(y, axis=(0, 2, 3), keepdims=True)
    var = jnp.mean((y - mean) ** 2, axis=(0, 2, 3), keepdims=True)
    return ((y - mean) * lax.rsqrt(var + EPS)
            * gamma.reshape(1, -1, 1, 1) + beta.reshape(1, -1, 1, 1))


if __name__ == "__main__":
    key = jax.random.PRNGKey(0)
    kx, kw = jax.random.split(key)
    # Input matching the module: (1, 208, 14, 14)
    x = jax.random.normal(kx, (1, C, H, W), dtype=jnp.float32)
    # Conv2d weight (out=208, in_per_group=8, 3, 3)
    w = 0.1 * jax.random.normal(kw, (C, CG, 3, 3), dtype=jnp.float32)
    # BatchNorm2d affine params at PyTorch default init: weight=1, bias=0
    gamma = jnp.ones((C,), dtype=jnp.float32)
    beta = jnp.zeros((C,), dtype=jnp.float32)

    y = jax.block_until_ready(relu_groupconv_bn(x, w, gamma, beta))
    y_ref = jax.block_until_ready(reference(x, w, gamma, beta))

    assert y.shape == (1, C, H, W) and y.dtype == jnp.float32
    assert jnp.allclose(y, y_ref, atol=1e-3, rtol=1e-3), "mismatch vs reference"
    print("KERNEL_OK")
</pallas_src>

<mosaic_0001>
module attributes {stable_mosaic.version = 11 : i64} {
  func.func @_gconv_bn_kernel(%arg0: i32, %arg1: memref<1152x256xf32, #tpu.memory_space<vmem>>, %arg2: memref<128x1152xf32, #tpu.memory_space<vmem>>, %arg3: memref<1x256xf32, #tpu.memory_space<vmem>>, %arg4: memref<128x1xf32, #tpu.memory_space<vmem>>, %arg5: memref<128x1xf32, #tpu.memory_space<vmem>>, %arg6: memref<128x256xf32, #tpu.memory_space<vmem>>) attributes {dimension_semantics = [#tpu.dimension_semantics<parallel>], iteration_bounds = array<i64: 2>, scalar_prefetch = 0 : i64, scratch_operands = 0 : i64, tpu.core_type = #tpu.core_type<tc>, window_params = [{transform_indices = @transform_0, window_bounds = array<i64: 1152, 256>}, {transform_indices = @transform_1, window_bounds = array<i64: 128, 1152>}, {pipeline_mode = #tpu.pipeline_mode<synchronous>, transform_indices = @transform_2, window_bounds = array<i64: 1, 256>}, {transform_indices = @transform_3, window_bounds = array<i64: 128, 1>}, {transform_indices = @transform_4, window_bounds = array<i64: 128, 1>}, {transform_indices = @transform_5, window_bounds = array<i64: 128, 256>}]} {
    %c0 = arith.constant 0 : index
    %c0_0 = arith.constant 0 : index
    %0 = vector.load %arg2[%c0, %c0_0] : memref<128x1152xf32, #tpu.memory_space<vmem>>, vector<128x1152xf32>
    %c0_1 = arith.constant 0 : index
    %c0_2 = arith.constant 0 : index
    %1 = vector.load %arg1[%c0_1, %c0_2] : memref<1152x256xf32, #tpu.memory_space<vmem>>, vector<1152x256xf32>
    %cst = arith.constant dense<0.000000e+00> : vector<128x256xf32>
    %2 = tpu.matmul %0, %1, %cst {dimension_numbers = #tpu.dot_dimension_numbers<[1], [0], [0], [1], [0, 0, 1, 1], [], []>} : vector<128x1152xf32>, vector<1152x256xf32>, vector<128x256xf32> -> vector<128x256xf32>
    %c0_3 = arith.constant 0 : index
    %c0_4 = arith.constant 0 : index
    %3 = vector.load %arg3[%c0_3, %c0_4] : memref<1x256xf32, #tpu.memory_space<vmem>>, vector<1x256xf32>
    %4 = vector.broadcast %3 : vector<1x256xf32> to vector<128x256xf32>
    %5 = arith.mulf %2, %4 : vector<128x256xf32>
    %cst_5 = arith.constant dense<0.000000e+00> : vector<128xf32>
    %6 = vector.multi_reduction <add>, %5, %cst_5 [1] : vector<128x256xf32> to vector<128xf32>
    %7 = vector.shape_cast %6 : vector<128xf32> to vector<128x1xf32>
    %8 = arith.mulf %5, %2 : vector<128x256xf32>
    %cst_6 = arith.constant dense<0.000000e+00> : vector<128xf32>
    %9 = vector.multi_reduction <add>, %8, %cst_6 [1] : vector<128x256xf32> to vector<128xf32>
    %10 = vector.shape_cast %9 : vector<128xf32> to vector<128x1xf32>
    %11 = arith.mulf %7, %7 : vector<128x1xf32>
    %12 = arith.subf %10, %11 : vector<128x1xf32>
    %cst_7 = arith.constant 9.99999974E-6 : f32
    %13 = vector.broadcast %cst_7 : f32 to vector<128x1xf32>
    %14 = arith.addf %12, %13 : vector<128x1xf32>
    %15 = math.rsqrt %14 : vector<128x1xf32>
    %c0_8 = arith.constant 0 : index
    %c0_9 = arith.constant 0 : index
    %16 = vector.load %arg4[%c0_8, %c0_9] : memref<128x1xf32, #tpu.memory_space<vmem>>, vector<128x1xf32>
    %17 = arith.mulf %15, %16 : vector<128x1xf32>
    %c0_10 = arith.constant 0 : index
    %c0_11 = arith.constant 0 : index
    %18 = vector.load %arg5[%c0_10, %c0_11] : memref<128x1xf32, #tpu.memory_space<vmem>>, vector<128x1xf32>
    %19 = arith.mulf %7, %17 : vector<128x1xf32>
    %20 = arith.subf %18, %19 : vector<128x1xf32>
    %21 = vector.broadcast %17 : vector<128x1xf32> to vector<128x256xf32>
    %22 = arith.mulf %2, %21 : vector<128x256xf32>
    %23 = vector.broadcast %20 : vector<128x1xf32> to vector<128x256xf32>
    %24 = arith.addf %22, %23 : vector<128x256xf32>
    %c0_12 = arith.constant 0 : index
    %c0_13 = arith.constant 0 : index
    %25 = vector.load %arg6[%c0_12, %c0_13] : memref<128x256xf32, #tpu.memory_space<vmem>>, vector<128x256xf32>
    tpu.vector_store %arg6[%c0_12, %c0_13], %24 {strides = array<i32>} : memref<128x256xf32, #tpu.memory_space<vmem>>, vector<128x256xf32>,
    return
  }
  func.func @transform_0(%arg0: i32) -> (i32, i32) {
    %c0_i32 = arith.constant 0 : i32
    %c0_i32_0 = arith.constant 0 : i32
    return %arg0, %c0_i32 : i32, i32
  }
  func.func @transform_1(%arg0: i32) -> (i32, i32) {
    %c0_i32 = arith.constant 0 : i32
    %c0_i32_0 = arith.constant 0 : i32
    return %arg0, %c0_i32 : i32, i32
  }
  func.func @transform_2(%arg0: i32) -> (i32, i32) {
    %c0_i32 = arith.constant 0 : i32
    %c0_i32_0 = arith.constant 0 : i32
    %c0_i32_1 = arith.constant 0 : i32
    return %c0_i32, %c0_i32_0 : i32, i32
  }
  func.func @transform_3(%arg0: i32) -> (i32, i32) {
    %c0_i32 = arith.constant 0 : i32
    %c0_i32_0 = arith.constant 0 : i32
    return %arg0, %c0_i32 : i32, i32
  }
  func.func @transform_4(%arg0: i32) -> (i32, i32) {
    %c0_i32 = arith.constant 0 : i32
    %c0_i32_0 = arith.constant 0 : i32
    return %arg0, %c0_i32 : i32, i32
  }
  func.func @transform_5(%arg0: i32) -> (i32, i32) {
    %c0_i32 = arith.constant 0 : i32
    %c0_i32_0 = arith.constant 0 : i32
    return %arg0, %c0_i32 : i32, i32
  }
}

</mosaic_0001>

<bundles_post_ra>
// kernel: relu_groupconv_bn.1
= control target key start
LH: loop header
LB: loop body
LE: loop exit
PB: predicated region body
PF: predicated region fallthrough
CT: control target
= control target key end

     0   :  { %s2758_s18 = smov 0   ;;  %s3813_s0 = inlined_call_operand.vmem [shape: f32[2304,256], index: 0, kind: input, shape index: {}]   ;;  %s3814_s1 = inlined_call_operand.vmem [shape: f32[256,1152], index: 1, kind: input, shape index: {}]   ;;  %s3815_s2 = inlined_call_operand.vmem [shape: f32[1,256], index: 2, kind: input, shape index: {}]   ;;  %s3816_s3 = inlined_call_operand.vmem [shape: f32[256,1], index: 3, kind: input, shape index: {}]   ;;  %s3817_s4 = inlined_call_operand.vmem [shape: f32[256,1], index: 4, kind: input, shape index: {}]   ;;  %s3818_s5 = inlined_call_operand.vmem [shape: f32[256,256], index: 5, kind: output, shape index: {}]  }
   0x1 LB: > { %s2205_s19 = sadd.s32 4294967295, %s2724_s18   ;;  %p2209_p0 = scmp.ge.s32.totalorder %s2724_s18, 1  ;;  %s2724_s18 = sphi %s2758_s18, %s15_s18  }
   0x2   : > { %p223_p1 = scmp.lt.s32.totalorder %s2724_s18, 3 }
   0x4   : > { %p224_p2 = pnand %p2209_p0, %p223_p1 }
   0x5   : > { %s269_s20 = smul.u32 (!%p224_p2), 144, %s2205_s19  ;;  %s2835_s25 = sshll.u32 (!%p224_p2), %s2205_s19, 4 }
   0x6   : > { %227 = sbr.rel (%p224_p2) target bundleno = 771 (0x303), region = 40  ;;  %p277_p4 = scmp.lt.s32.totalorder (!%p224_p2), %s2835_s25, 31 }
   0x7   : > { %p270_p3 = scmp.lt.s32.totalorder (!%p224_p2), %s269_s20, 287 }
   0xd   : > { %s3820_s20 = smov (!%p270_p3, %s269_s20), 287  ;;  %s3822_s25 = smov (!%p277_p4, %s2835_s25), 31 }
   0xe   : > { %s2223_s21 = sshll.u32 %s3820_s20, 4  ;;  %s2673_s26 = smul.u32 72, %s3822_s25 }
   0xf   : > { %s2771_s24 = scalar_lea.vmem %s3813_s0, %s2223_s21  ;;  %s2215_s7 = sshll.u32 %s3822_s25, 3 }
  0x10   : > { %v447_v0 = vld [vmem:[%s2771_s24 + $0x8] sm:$0xff]  ;;  %v449_v1 = vld [vmem:[%s2771_s24 + $0x18] sm:$0xff]  ;;  %v446_v5 = vld [vmem:[%s2771_s24] sm:$0xff]  ;;  %s2879_s29 = scalar_lea.vmem %s3814_s1, %s2673_s26  ;;  %s3645_s10 = scalar_lea.vmem %s3816_s3, %s2215_s7 }
  0x11   : > { %v575_v2 = vld [vmem:[%s2771_s24 + $0x408] sm:$0xff]  ;;  %v2225_v3 = vpack.c.bf16 %v449_v1, %v447_v0  ;;  %v577_v4 = vld [vmem:[%s2771_s24 + $0x418] sm:$0xff]  ;;  %v448_v6 = vld [vmem:[%s2771_s24 + $0x10] sm:$0xff]  ;;  %s3658_s13 = scalar_lea.vmem %s3817_s4, %s2215_s7  ;;  %s2224_s14 = sshll.u32 %s3822_s25, 4 }
  0x12   : > { %v2353_v7 = vpack.c.bf16 %v577_v4, %v575_v2  ;;  %v2227_v8 = vpack.c.bf16 %v448_v6, %v446_v5  ;;  %v574_v9 = vld [vmem:[%s2771_s24 + $0x400] sm:$0xff]  ;;  %v576_v10 = vld [vmem:[%s2771_s24 + $0x410] sm:$0xff]  ;;  %v451_v11 = vld [vmem:[%s2771_s24 + $0x28] sm:$0xff]  ;;  %s3748_s17 = scalar_lea.vmem %s3818_s5, %s2224_s14 }
  0x13   : > { %2226 = vmatprep.subr.bf16.mxu1 %v2225_v3  ;;  %v2355_v12 = vpack.c.bf16 %v576_v10, %v574_v9  ;;  %v453_v13 = vld [vmem:[%s2771_s24 + $0x38] sm:$0xff]  ;;  %v579_v14 = vld [vmem:[%s2771_s24 + $0x428] sm:$0xff]  ;;  %v450_v18 = vld [vmem:[%s2771_s24 + $0x20] sm:$0xff] }
  0x14   : > { %v581_v15 = vld [vmem:[%s2771_s24 + $0x438] sm:$0xff]  ;;  %2354 = vmatprep.subr.bf16.mxu0 %v2353_v7  ;;  %2228 = vmatpush1.bf16.msra.mxu1 %v2227_v8  ;;  %v2229_v16 = vpack.c.bf16 %v453_v13, %v451_v11  ;;  %v452_v19 = vld [vmem:[%s2771_s24 + $0x30] sm:$0xff]  ;;  %v578_v20 = vld [vmem:[%s2771_s24 + $0x420] sm:$0xff] }
  0x15   : > { %v2357_v17 = vpack.c.bf16 %v581_v15, %v579_v14  ;;  %2356 = vmatpush1.bf16.msra.mxu0 %v2355_v12  ;;  %v2231_v21 = vpack.c.bf16 %v452_v19, %v450_v18  ;;  %v580_v22 = vld [vmem:[%s2771_s24 + $0x430] sm:$0xff]  ;;  %v455_v23 = vld [vmem:[%s2771_s24 + $0x48] sm:$0xff]  ;;  %v457_v24 = vld [vmem:[%s2771_s24 + $0x58] sm:$0xff] }
  0x16   : > { %2230 = vmatprep.subr.bf16.mxu1 %v2229_v16  ;;  %v2359_v25 = vpack.c.bf16 %v580_v22, %v578_v20  ;;  %v2233_v26 = vpack.c.bf16 %v457_v24, %v455_v23  ;;  %v583_v27 = vld [vmem:[%s2771_s24 + $0x448] sm:$0xff]  ;;  %v585_v28 = vld [vmem:[%s2771_s24 + $0x458] sm:$0xff]  ;;  %v454_v29 = vld [vmem:[%s2771_s24 + $0x40] sm:$0xff] }
  0x17   : > { %2358 = vmatprep.subr.bf16.mxu0 %v2357_v17  ;;  %v2361_v30 = vpack.c.bf16 %v585_v28, %v583_v27  ;;  %v456_v31 = vld [vmem:[%s2771_s24 + $0x50] sm:$0xff]  ;;  %v582_v32 = vld [vmem:[%s2771_s24 + $0x440] sm:$0xff]  ;;  %v459_v35 = vld [vmem:[%s2771_s24 + $0x68] sm:$0xff] }
  0x18   : > { %v584_v33 = vld [vmem:[%s2771_s24 + $0x450] sm:$0xff]  ;;  %2232 = vmatpush1.bf16.msra.mxu1 %v2231_v21  ;;  %v2235_v34 = vpack.c.bf16 %v456_v31, %v454_v29  ;;  %v461_v36 = vld [vmem:[%s2771_s24 + $0x78] sm:$0xff]  ;;  %v587_v37 = vld [vmem:[%s2771_s24 + $0x468] sm:$0xff] }
  0x19   : > { %2360 = vmatpush1.bf16.msra.mxu0 %v2359_v25  ;;  %2234 = vmatprep.subr.bf16.mxu1 %v2233_v26  ;;  %v2363_v38 = vpack.c.bf16 %v584_v33, %v582_v32  ;;  %v2237_v39 = vpack.c.bf16 %v461_v36, %v459_v35  ;;  %v589_v40 = vld [vmem:[%s2771_s24 + $0x478] sm:$0xff]  ;;  %v458_v41 = vld [vmem:[%s2771_s24 + $0x60] sm:$0xff]  ;;  %v460_v42 = vld [vmem:[%s2771_s24 + $0x70] sm:$0xff] }
  0x1a   : > { %2362 = vmatprep.subr.bf16.mxu0 %v2361_v30  ;;  %v2365_v43 = vpack.c.bf16 %v589_v40, %v587_v37  ;;  %v586_v44 = vld [vmem:[%s2771_s24 + $0x460] sm:$0xff]  ;;  %v588_v45 = vld [vmem:[%s2771_s24 + $0x470] sm:$0xff]  ;;  %v463_v46 = vld [vmem:[%s2771_s24 + $0x88] sm:$0xff]  ;;  %v2239_v50 = vpack.c.bf16 %v460_v42, %v458_v41 }
  0x1b   : > { %v465_v47 = vld [vmem:[%s2771_s24 + $0x98] sm:$0xff]  ;;  %v591_v48 = vld [vmem:[%s2771_s24 + $0x488] sm:$0xff]  ;;  %v2367_v51 = vpack.c.bf16 %v588_v45, %v586_v44  ;;  %v462_v53 = vld [vmem:[%s2771_s24 + $0x80] sm:$0xff] }
  0x1c   : > { %v593_v49 = vld [vmem:[%s2771_s24 + $0x498] sm:$0xff]  ;;  %2236 = vmatpush1.bf16.msra.mxu1 %v2235_v34  ;;  %v2241_v52 = vpack.c.bf16 %v465_v47, %v463_v46  ;;  %v464_v54 = vld [vmem:[%s2771_s24 + $0x90] sm:$0xff]  ;;  %v590_v55 = vld [vmem:[%s2771_s24 + $0x480] sm:$0xff] }
  0x1d   : > { %2364 = vmatpush1.bf16.msra.mxu0 %v2363_v38  ;;  %2238 = vmatprep.subr.bf16.mxu1 %v2237_v39  ;;  %v2369_v56 = vpack.c.bf16 %v593_v49, %v591_v48  ;;  %v592_v57 = vld [vmem:[%s2771_s24 + $0x490] sm:$0xff]  ;;  %v467_v58 = vld [vmem:[%s2771_s24 + $0xa8] sm:$0xff]  ;;  %v469_v59 = vld [vmem:[%s2771_s24 + $0xb8] sm:$0xff]  ;;  %v2243_v62 = vpack.c.bf16 %v464_v54, %v462_v53 }
  0x1e   : > { %2366 = vmatprep.subr.bf16.mxu0 %v2365_v43  ;;  %v595_v60 = vld [vmem:[%s2771_s24 + $0x4a8] sm:$0xff]  ;;  %v597_v61 = vld [vmem:[%s2771_s24 + $0x4b8] sm:$0xff]  ;;  %v2371_v63 = vpack.c.bf16 %v592_v57, %v590_v55  ;;  %v2245_v0 = vpack.c.bf16 %v469_v59, %v467_v58  ;;  %v466_v1 = vld [vmem:[%s2771_s24 + $0xa0] sm:$0xff] }
  0x1f   : > { %v468_v2 = vld [vmem:[%s2771_s24 + $0xb0] sm:$0xff]  ;;  %v594_v3 = vld [vmem:[%s2771_s24 + $0x4a0] sm:$0xff]  ;;  %v2373_v4 = vpack.c.bf16 %v597_v61, %v595_v60  ;;  %v471_v6 = vld [vmem:[%s2771_s24 + $0xc8] sm:$0xff] }
  0x20   : > { %2240 = vmatpush1.bf16.msra.mxu1 %v2239_v50  ;;  %v596_v5 = vld [vmem:[%s2771_s24 + $0x4b0] sm:$0xff]  ;;  %v473_v7 = vld [vmem:[%s2771_s24 + $0xd8] sm:$0xff]  ;;  %v599_v8 = vld [vmem:[%s2771_s24 + $0x4c8] sm:$0xff]  ;;  %v2247_v10 = vpack.c.bf16 %v468_v2, %v466_v1 }
  0x21   : > { %2368 = vmatpush1.bf16.msra.mxu0 %v2367_v51  ;;  %2242 = vmatprep.subr.bf16.mxu1 %v2241_v52  ;;  %v601_v9 = vld [vmem:[%s2771_s24 + $0x4d8] sm:$0xff]  ;;  %v2375_v11 = vpack.c.bf16 %v596_v5, %v594_v3  ;;  %v2249_v12 = vpack.c.bf16 %v473_v7, %v471_v6  ;;  %v470_v13 = vld [vmem:[%s2771_s24 + $0xc0] sm:$0xff]  ;;  %v472_v14 = vld [vmem:[%s2771_s24 + $0xd0] sm:$0xff] }
  0x22   : > { %2370 = vmatprep.subr.bf16.mxu0 %v2369_v56  ;;  %v598_v15 = vld [vmem:[%s2771_s24 + $0x4c0] sm:$0xff]  ;;  %v2377_v16 = vpack.c.bf16 %v601_v9, %v599_v8  ;;  %v600_v17 = vld [vmem:[%s2771_s24 + $0x4d0] sm:$0xff]  ;;  %v475_v18 = vld [vmem:[%s2771_s24 + $0xe8] sm:$0xff]  ;;  %v2251_v22 = vpack.c.bf16 %v472_v14, %v470_v13 }
  0x23   : > { %v477_v19 = vld [vmem:[%s2771_s24 + $0xf8] sm:$0xff]  ;;  %v603_v20 = vld [vmem:[%s2771_s24 + $0x4e8] sm:$0xff]  ;;  %v2379_v23 = vpack.c.bf16 %v600_v17, %v598_v15  ;;  %v474_v25 = vld [vmem:[%s2771_s24 + $0xe0] sm:$0xff] }
  0x24   : > { %2244 = vmatpush1.bf16.msra.mxu1 %v2243_v62  ;;  %v605_v21 = vld [vmem:[%s2771_s24 + $0x4f8] sm:$0xff]  ;;  %v2253_v24 = vpack.c.bf16 %v477_v19, %v475_v18  ;;  %v476_v26 = vld [vmem:[%s2771_s24 + $0xf0] sm:$0xff]  ;;  %v602_v27 = vld [vmem:[%s2771_s24 + $0x4e0] sm:$0xff] }
  0x25   : > { %2372 = vmatpush1.bf16.msra.mxu0 %v2371_v63  ;;  %2246 = vmatprep.subr.bf16.mxu1 %v2245_v0  ;;  %v2381_v28 = vpack.c.bf16 %v605_v21, %v603_v20  ;;  %v604_v29 = vld [vmem:[%s2771_s24 + $0x4f0] sm:$0xff]  ;;  %v479_v30 = vld [vmem:[%s2771_s24 + $0x108] sm:$0xff]  ;;  %v481_v31 = vld [vmem:[%s2771_s24 + $0x118] sm:$0xff]  ;;  %v2255_v34 = vpack.c.bf16 %v476_v26, %v474_v25 }
  0x26   : > { %2374 = vmatprep.subr.bf16.mxu0 %v2373_v4  ;;  %v607_v32 = vld [vmem:[%s2771_s24 + $0x508] sm:$0xff]  ;;  %v609_v33 = vld [vmem:[%s2771_s24 + $0x518] sm:$0xff]  ;;  %v2383_v35 = vpack.c.bf16 %v604_v29, %v602_v27  ;;  %v2257_v36 = vpack.c.bf16 %v481_v31, %v479_v30  ;;  %v478_v37 = vld [vmem:[%s2771_s24 + $0x100] sm:$0xff] }
  0x27   : > { %v480_v38 = vld [vmem:[%s2771_s24 + $0x110] sm:$0xff]  ;;  %v606_v39 = vld [vmem:[%s2771_s24 + $0x500] sm:$0xff]  ;;  %v2385_v40 = vpack.c.bf16 %v609_v33, %v607_v32  ;;  %v483_v42 = vld [vmem:[%s2771_s24 + $0x128] sm:$0xff] }
  0x28   : > { %2248 = vmatpush1.bf16.msra.mxu1 %v2247_v10  ;;  %v608_v41 = vld [vmem:[%s2771_s24 + $0x510] sm:$0xff]  ;;  %v485_v43 = vld [vmem:[%s2771_s24 + $0x138] sm:$0xff]  ;;  %v611_v44 = vld [vmem:[%s2771_s24 + $0x528] sm:$0xff]  ;;  %v2259_v46 = vpack.c.bf16 %v480_v38, %v478_v37 }
  0x29   : > { %2376 = vmatpush1.bf16.msra.mxu0 %v2375_v11  ;;  %2250 = vmatprep.subr.bf16.mxu1 %v2249_v12  ;;  %v613_v45 = vld [vmem:[%s2771_s24 + $0x538] sm:$0xff]  ;;  %v2387_v47 = vpack.c.bf16 %v608_v41, %v606_v39  ;;  %v2261_v48 = vpack.c.bf16 %v485_v43, %v483_v42  ;;  %v482_v49 = vld [vmem:[%s2771_s24 + $0x120] sm:$0xff]  ;;  %v484_v50 = vld [vmem:[%s2771_s24 + $0x130] sm:$0xff] }
  0x2a   : > { %2378 = vmatprep.subr.bf16.mxu0 %v2377_v16  ;;  %v610_v51 = vld [vmem:[%s2771_s24 + $0x520] sm:$0xff]  ;;  %v2389_v52 = vpack.c.bf16 %v613_v45, %v611_v44  ;;  %v612_v53 = vld [vmem:[%s2771_s24 + $0x530] sm:$0xff]  ;;  %v487_v54 = vld [vmem:[%s2771_s24 + $0x148] sm:$0xff]  ;;  %v2263_v58 = vpack.c.bf16 %v484_v50, %v482_v49 }
  0x2b   : > { %v489_v55 = vld [vmem:[%s2771_s24 + $0x158] sm:$0xff]  ;;  %v615_v56 = vld [vmem:[%s2771_s24 + $0x548] sm:$0xff]  ;;  %v2391_v59 = vpack.c.bf16 %v612_v53, %v610_v51  ;;  %v486_v61 = vld [vmem:[%s2771_s24 + $0x140] sm:$0xff] }
  0x2c   : > { %2252 = vmatpush1.bf16.msra.mxu1 %v2251_v22  ;;  %v617_v57 = vld [vmem:[%s2771_s24 + $0x558] sm:$0xff]  ;;  %v2265_v60 = vpack.c.bf16 %v489_v55, %v487_v54  ;;  %v488_v62 = vld [vmem:[%s2771_s24 + $0x150] sm:$0xff]  ;;  %v614_v63 = vld [vmem:[%s2771_s24 + $0x540] sm:$0xff] }
  0x2d   : > { %2380 = vmatpush1.bf16.msra.mxu0 %v2379_v23  ;;  %2254 = vmatprep.subr.bf16.mxu1 %v2253_v24  ;;  %v2393_v0 = vpack.c.bf16 %v617_v57, %v615_v56  ;;  %v616_v1 = vld [vmem:[%s2771_s24 + $0x550] sm:$0xff]  ;;  %v491_v2 = vld [vmem:[%s2771_s24 + $0x168] sm:$0xff]  ;;  %v493_v3 = vld [vmem:[%s2771_s24 + $0x178] sm:$0xff]  ;;  %v2267_v6 = vpack.c.bf16 %v488_v62, %v486_v61 }
  0x2e   : > { %2382 = vmatprep.subr.bf16.mxu0 %v2381_v28  ;;  %v619_v4 = vld [vmem:[%s2771_s24 + $0x568] sm:$0xff]  ;;  %v621_v5 = vld [vmem:[%s2771_s24 + $0x578] sm:$0xff]  ;;  %v490_v7 = vld [vmem:[%s2771_s24 + $0x160] sm:$0xff]  ;;  %v2395_v8 = vpack.c.bf16 %v616_v1, %v614_v63  ;;  %v2269_v9 = vpack.c.bf16 %v493_v3, %v491_v2 }
  0x2f   : > { %v492_v10 = vld [vmem:[%s2771_s24 + $0x170] sm:$0xff]  ;;  %v618_v11 = vld [vmem:[%s2771_s24 + $0x560] sm:$0xff]  ;;  %v2397_v13 = vpack.c.bf16 %v621_v5, %v619_v4  ;;  %v495_v14 = vld [vmem:[%s2771_s24 + $0x188] sm:$0xff] }
  0x30   : > { %2256 = vmatpush1.bf16.msra.mxu1 %v2255_v34  ;;  %v620_v12 = vld [vmem:[%s2771_s24 + $0x570] sm:$0xff]  ;;  %v497_v15 = vld [vmem:[%s2771_s24 + $0x198] sm:$0xff]  ;;  %v303_v16 = vld [vmem:[%s2879_s29 + $0x8] sm:$0xff]  ;;  %v2271_v20 = vpack.c.bf16 %v492_v10, %v490_v7 }
  0x31   : > { %2384 = vmatpush1.bf16.msra.mxu0 %v2383_v35  ;;  %2258 = vmatprep.subr.bf16.mxu1 %v2257_v36  ;;  %v623_v17 = vld [vmem:[%s2771_s24 + $0x588] sm:$0xff]  ;;  %v625_v18 = vld [vmem:[%s2771_s24 + $0x598] sm:$0xff]  ;;  %v2399_v21 = vpack.c.bf16 %v620_v12, %v618_v11  ;;  %v2273_v22 = vpack.c.bf16 %v497_v15, %v495_v14  ;;  %v494_v23 = vld [vmem:[%s2771_s24 + $0x180] sm:$0xff] }
  0x32   : > { %2386 = vmatprep.subr.bf16.mxu0 %v2385_v40  ;;  %798 = vmatprep.mubr.f32.mxu1 %v303_v16  ;;  %v307_v19 = vld [vmem:[%s2879_s29 + $0x28] sm:$0xff]  ;;  %v496_v24 = vld [vmem:[%s2771_s24 + $0x190] sm:$0xff]  ;;  %v622_v25 = vld [vmem:[%s2771_s24 + $0x580] sm:$0xff]  ;;  %v2401_v26 = vpack.c.bf16 %v625_v18, %v623_v17 }
  0x33   : > { %1120 = vmatprep.mubr.f32.mxu0 %v307_v19  ;;  %v624_v27 = vld [vmem:[%s2771_s24 + $0x590] sm:$0xff]  ;;  %v499_v28 = vld [vmem:[%s2771_s24 + $0x1a8] sm:$0xff]  ;;  %v501_v29 = vld [vmem:[%s2771_s24 + $0x1b8] sm:$0xff]  ;;  %v2275_v32 = vpack.c.bf16 %v496_v24, %v494_v23 }
  0x34   : > { %2260 = vmatpush1.bf16.msra.mxu1 %v2259_v46  ;;  %v627_v30 = vld [vmem:[%s2771_s24 + $0x5a8] sm:$0xff]  ;;  %v629_v31 = vld [vmem:[%s2771_s24 + $0x5b8] sm:$0xff]  ;;  %v2403_v33 = vpack.c.bf16 %v624_v27, %v622_v25  ;;  %v2277_v34 = vpack.c.bf16 %v501_v29, %v499_v28  ;;  %v498_v35 = vld [vmem:[%s2771_s24 + $0x1a0] sm:$0xff] }
  0x35   : > { %2388 = vmatpush1.bf16.msra.mxu0 %v2387_v47  ;;  %2262 = vmatprep.subr.bf16.mxu1 %v2261_v48  ;;  %v500_v36 = vld [vmem:[%s2771_s24 + $0x1b0] sm:$0xff]  ;;  %v626_v37 = vld [vmem:[%s2771_s24 + $0x5a0] sm:$0xff]  ;;  %v2405_v38 = vpack.c.bf16 %v629_v31, %v627_v30  ;;  %v503_v40 = vld [vmem:[%s2771_s24 + $0x1c8] sm:$0xff] }
  0x36   : > { %2390 = vmatprep.subr.bf16.mxu0 %v2389_v52  ;;  %v628_v39 = vld [vmem:[%s2771_s24 + $0x5b0] sm:$0xff]  ;;  %v505_v41 = vld [vmem:[%s2771_s24 + $0x1d8] sm:$0xff]  ;;  %v631_v42 = vld [vmem:[%s2771_s24 + $0x5c8] sm:$0xff]  ;;  %v2279_v44 = vpack.c.bf16 %v500_v36, %v498_v35 }
  0x37   : > { %v633_v43 = vld [vmem:[%s2771_s24 + $0x5d8] sm:$0xff]  ;;  %v2407_v45 = vpack.c.bf16 %v628_v39, %v626_v37  ;;  %v2281_v46 = vpack.c.bf16 %v505_v41, %v503_v40  ;;  %v502_v47 = vld [vmem:[%s2771_s24 + $0x1c0] sm:$0xff]  ;;  %v504_v48 = vld [vmem:[%s2771_s24 + $0x1d0] sm:$0xff] }
  0x38   : > { %2264 = vmatpush1.bf16.msra.mxu1 %v2263_v58  ;;  %v630_v49 = vld [vmem:[%s2771_s24 + $0x5c0] sm:$0xff]  ;;  %v2409_v50 = vpack.c.bf16 %v633_v43, %v631_v42  ;;  %v632_v51 = vld [vmem:[%s2771_s24 + $0x5d0] sm:$0xff]  ;;  %v507_v52 = vld [vmem:[%s2771_s24 + $0x1e8] sm:$0xff]  ;;  %v2283_v56 = vpack.c.bf16 %v504_v48, %v502_v47 }
  0x39   : > { %2392 = vmatpush1.bf16.msra.mxu0 %v2391_v59  ;;  %2266 = vmatprep.subr.bf16.mxu1 %v2265_v60  ;;  %v509_v53 = vld [vmem:[%s2771_s24 + $0x1f8] sm:$0xff]  ;;  %v635_v54 = vld [vmem:[%s2771_s24 + $0x5e8] sm:$0xff]  ;;  %v2411_v57 = vpack.c.bf16 %v632_v51, %v630_v49  ;;  %v506_v59 = vld [vmem:[%s2771_s24 + $0x1e0] sm:$0xff] }
  0x3a   : > { %2394 = vmatprep.subr.bf16.mxu0 %v2393_v0  ;;  %v637_v55 = vld [vmem:[%s2771_s24 + $0x5f8] sm:$0xff]  ;;  %v2285_v58 = vpack.c.bf16 %v509_v53, %v507_v52  ;;  %v508_v60 = vld [vmem:[%s2771_s24 + $0x1f0] sm:$0xff]  ;;  %v634_v61 = vld [vmem:[%s2771_s24 + $0x5e0] sm:$0xff] }
  0x3b   : > { %v2413_v62 = vpack.c.bf16 %v637_v55, %v635_v54  ;;  %v636_v63 = vld [vmem:[%s2771_s24 + $0x5f0] sm:$0xff]  ;;  %v511_v0 = vld [vmem:[%s2771_s24 + $0x208] sm:$0xff]  ;;  %v513_v1 = vld [vmem:[%s2771_s24 + $0x218] sm:$0xff]  ;;  %v2287_v4 = vpack.c.bf16 %v508_v60, %v506_v59 }
  0x3c   : > { %2268 = vmatpush1.bf16.msra.mxu1 %v2267_v6  ;;  %v639_v2 = vld [vmem:[%s2771_s24 + $0x608] sm:$0xff]  ;;  %v641_v3 = vld [vmem:[%s2771_s24 + $0x618] sm:$0xff]  ;;  %v2415_v5 = vpack.c.bf16 %v636_v63, %v634_v61  ;;  %v2289_v6 = vpack.c.bf16 %v513_v1, %v511_v0  ;;  %v510_v7 = vld [vmem:[%s2771_s24 + $0x200] sm:$0xff] }
  0x3d   : > { %2396 = vmatpush1.bf16.msra.mxu0 %v2395_v8  ;;  %2270 = vmatprep.subr.bf16.mxu1 %v2269_v9  ;;  %v512_v8 = vld [vmem:[%s2771_s24 + $0x210] sm:$0xff]  ;;  %v2925_v9 = vpack.c.bf16 %v641_v3, %v639_v2  ;;  %v638_v10 = vld [vmem:[%s2771_s24 + $0x600] sm:$0xff]  ;;  %v515_v12 = vld [vmem:[%s2771_s24 + $0x228] sm:$0xff] }
  0x3e   : > { %2398 = vmatprep.subr.bf16.mxu0 %v2397_v13  ;;  %v640_v11 = vld [vmem:[%s2771_s24 + $0x610] sm:$0xff]  ;;  %v517_v13 = vld [vmem:[%s2771_s24 + $0x238] sm:$0xff]  ;;  %v302_v14 = vld [vmem:[%s2879_s29] sm:$0xff]  ;;  %v2291_v15 = vpack.c.bf16 %v512_v8, %v510_v7 }
  0x3f   : > { %v643_v16 = vld [vmem:[%s2771_s24 + $0x628] sm:$0xff]  ;;  %v645_v17 = vld [vmem:[%s2771_s24 + $0x638] sm:$0xff]  ;;  %v306_v18 = vld [vmem:[%s2879_s29 + $0x20] sm:$0xff]  ;;  %v2935_v19 = vpack.c.bf16 %v640_v11, %v638_v10  ;;  %v2293_v23 = vpack.c.bf16 %v517_v13, %v515_v12 }
  0x40   : > { %2272 = vmatpush1.bf16.msra.mxu1 %v2271_v20  ;;  %v514_v20 = vld [vmem:[%s2771_s24 + $0x220] sm:$0xff]  ;;  %v644_v25 = vld [vmem:[%s2771_s24 + $0x630] sm:$0xff]  ;;  %v2944_v27 = vpack.c.bf16 %v645_v17, %v643_v16  ;;  %v519_v28 = vld [vmem:[%s2771_s24 + $0x248] sm:$0xff] }
  0x41   : > { %2400 = vmatpush1.bf16.msra.mxu0 %v2399_v21  ;;  %2274 = vmatprep.subr.bf16.mxu1 %v2273_v22  ;;  %v516_v21 = vld [vmem:[%s2771_s24 + $0x230] sm:$0xff]  ;;  %v642_v24 = vld [vmem:[%s2771_s24 + $0x620] sm:$0xff]  ;;  %v521_v29 = vld [vmem:[%s2771_s24 + $0x258] sm:$0xff] }
  0x42   : > { %2402 = vmatprep.subr.bf16.mxu0 %v2401_v26  ;;  %v312_v22 = vld [vmem:[%s2879_s29 + $0x50] sm:$0xff]  ;;  %v311_v30 = vld [vmem:[%s2879_s29 + $0x48] sm:$0xff]  ;;  %v2295_v31 = vpack.c.bf16 %v516_v21, %v514_v20  ;;  %v2953_v35 = vpack.c.bf16 %v644_v25, %v642_v24  ;;  %v518_v36 = vld [vmem:[%s2771_s24 + $0x240] sm:$0xff]  ;;  %v2297_v39 = vpack.c.bf16 %v521_v29, %v519_v28 }
  0x43   : > { %v316_v26 = vld [vmem:[%s2879_s29 + $0x70] sm:$0xff]  ;;  %v646_v40 = vld [vmem:[%s2771_s24 + $0x640] sm:$0xff]  ;;  %v325_v42 = vld [vmem:[%s2879_s29 + $0xb8] sm:$0xff] }
  0x44   : > { %2276 = vmatpush1.bf16.msra.mxu1 %v2275_v32  ;;  %v647_v32 = vld [vmem:[%s2771_s24 + $0x648] sm:$0xff]  ;;  %v520_v37 = vld [vmem:[%s2771_s24 + $0x250] sm:$0xff]  ;;  %v653_v49 = vld [vmem:[%s2771_s24 + $0x678] sm:$0xff] }
  0x45   : > { %2404 = vmatpush1.bf16.msra.mxu0 %v2403_v33  ;;  %2278 = vmatprep.subr.bf16.mxu1 %v2277_v34  ;;  %v649_v33 = vld [vmem:[%s2771_s24 + $0x658] sm:$0xff]  ;;  %v315_v34 = vld [vmem:[%s2879_s29 + $0x68] sm:$0xff]  ;;  %v648_v41 = vld [vmem:[%s2771_s24 + $0x650] sm:$0xff]  ;;  %v2299_v47 = vpack.c.bf16 %v520_v37, %v518_v36 }
  0x46   : > { %2406 = vmatprep.subr.bf16.mxu0 %v2405_v38  ;;  %v321_v38 = vld [vmem:[%s2879_s29 + $0x98] sm:$0xff]  ;;  %v2962_v43 = vpack.c.bf16 %v649_v33, %v647_v32  ;;  %v651_v48 = vld [vmem:[%s2771_s24 + $0x668] sm:$0xff]  ;;  %v2971_v51 = vpack.c.bf16 %v648_v41, %v646_v40  ;;  %v522_v52 = vld [vmem:[%s2771_s24 + $0x260] sm:$0xff] }
  0x47   : > { %v524_v53 = vld [vmem:[%s2771_s24 + $0x270] sm:$0xff]  ;;  %v330_v54 = vld [vmem:[%s2879_s29 + $0xe0] sm:$0xff]  ;;  %v2980_v59 = vpack.c.bf16 %v653_v49, %v651_v48  ;;  %v527_v60 = vld [vmem:[%s2771_s24 + $0x288] sm:$0xff] }
  0x48   : > { %2280 = vmatpush1.bf16.msra.mxu1 %v2279_v44  ;;  %v523_v44 = vld [vmem:[%s2771_s24 + $0x268] sm:$0xff]  ;;  %v529_v61 = vld [vmem:[%s2771_s24 + $0x298] sm:$0xff]  ;;  %v2303_v63 = vpack.c.bf16 %v524_v53, %v522_v52  ;;  %v654_v8 = vld [vmem:[%s2771_s24 + $0x680] sm:$0xff] }
  0x49   : > { %2408 = vmatpush1.bf16.msra.mxu0 %v2407_v45  ;;  %2282 = vmatprep.subr.bf16.mxu1 %v2281_v46  ;;  %v525_v45 = vld [vmem:[%s2771_s24 + $0x278] sm:$0xff]  ;;  %v320_v46 = vld [vmem:[%s2879_s29 + $0x90] sm:$0xff]  ;;  %v655_v0 = vld [vmem:[%s2771_s24 + $0x688] sm:$0xff]  ;;  %v2305_v7 = vpack.c.bf16 %v529_v61, %v527_v60 }
  0x4a   : > { %2410 = vmatprep.subr.bf16.mxu0 %v2409_v50  ;;  %v324_v50 = vld [vmem:[%s2879_s29 + $0xb0] sm:$0xff]  ;;  %v2301_v55 = vpack.c.bf16 %v525_v45, %v523_v44  ;;  %v657_v1 = vld [vmem:[%s2771_s24 + $0x698] sm:$0xff]  ;;  %v343_v11 = vld [vmem:[%s2879_s29 + $0x148] sm:$0xff] }
  0x4b   : > { %v333_v2 = vld [vmem:[%s2879_s29 + $0xf8] sm:$0xff]  ;;  %v656_v10 = vld [vmem:[%s2771_s24 + $0x690] sm:$0xff]  ;;  %v2998_v12 = vpack.c.bf16 %v657_v1, %v655_v0  ;;  %v531_v13 = vld [vmem:[%s2771_s24 + $0x2a8] sm:$0xff] }
  0x4c   : > { %2284 = vmatpush1.bf16.msra.mxu1 %v2283_v56  ;;  %v650_v56 = vld [vmem:[%s2771_s24 + $0x660] sm:$0xff]  ;;  %v659_v17 = vld [vmem:[%s2771_s24 + $0x6a8] sm:$0xff]  ;;  %v3007_v21 = vpack.c.bf16 %v656_v10, %v654_v8  ;;  %v348_v24 = vld [vmem:[%s2879_s29 + $0x170] sm:$0xff] }
  0x4d   : > { %2412 = vmatpush1.bf16.msra.mxu0 %v2411_v57  ;;  %2286 = vmatprep.subr.bf16.mxu1 %v2285_v58  ;;  %v652_v57 = vld [vmem:[%s2771_s24 + $0x670] sm:$0xff]  ;;  %v334_v58 = vld [vmem:[%s2879_s29 + $0x100] sm:$0xff]  ;;  %v537_v32 = vld [vmem:[%s2771_s24 + $0x2d8] sm:$0xff] }
  0x4e   : > { %2414 = vmatprep.subr.bf16.mxu0 %v2413_v62  ;;  %v329_v62 = vld [vmem:[%s2879_s29 + $0xd8] sm:$0xff]  ;;  %v2989_v3 = vpack.c.bf16 %v652_v57, %v650_v56  ;;  %v342_v20 = vld [vmem:[%s2879_s29 + $0x140] sm:$0xff]  ;;  %v660_v28 = vld [vmem:[%s2771_s24 + $0x6b0] sm:$0xff] }
  0x4f   : > { %v352_v29 = vld [vmem:[%s2879_s29 + $0x190] sm:$0xff]  ;;  %v347_v33 = vld [vmem:[%s2879_s29 + $0x168] sm:$0xff]  ;;  %v665_v37 = vld [vmem:[%s2771_s24 + $0x6d8] sm:$0xff] }
  0x50   : > { %2288 = vmatpush1.bf16.msra.mxu1 %v2287_v4  ;;  %v526_v4 = vld [vmem:[%s2771_s24 + $0x280] sm:$0xff]  ;;  %v663_v36 = vld [vmem:[%s2771_s24 + $0x6c8] sm:$0xff]  ;;  %v536_v41 = vld [vmem:[%s2771_s24 + $0x2d0] sm:$0xff] }
  0x51   : > { %2416 = vmatpush1.bf16.msra.mxu0 %v2415_v5  ;;  %2290 = vmatprep.subr.bf16.mxu1 %v2289_v6  ;;  %v528_v5 = vld [vmem:[%s2771_s24 + $0x290] sm:$0xff]  ;;  %v339_v6 = vld [vmem:[%s2879_s29 + $0x128] sm:$0xff]  ;;  %v534_v40 = vld [vmem:[%s2771_s24 + $0x2c0] sm:$0xff]  ;;  %v3034_v48 = vpack.c.bf16 %v665_v37, %v663_v36 }
  0x52   : > { %2418 = vmatprep.subr.bf16.mxu0 %v2925_v9  ;;  %v2307_v16 = vpack.c.bf16 %v528_v5, %v526_v4  ;;  %v662_v45 = vld [vmem:[%s2771_s24 + $0x6c0] sm:$0xff]  ;;  %v539_v49 = vld [vmem:[%s2771_s24 + $0x2e8] sm:$0xff]  ;;  %v356_v52 = vld [vmem:[%s2879_s29 + $0x1b0] sm:$0xff]  ;;  %v2315_v53 = vpack.c.bf16 %v536_v41, %v534_v40 }
  0x53   : > { %799 = vmatmul.mubr.f32.vlgmr.msra.gmra.mrb[0].mxu1 %v302_v14  ;;  %v533_v14 = vld [vmem:[%s2771_s24 + $0x2b8] sm:$0xff]  ;;  %v360_v56 = vld [vmem:[%s2879_s29 + $0x1d0] sm:$0xff]  ;;  %v366_v61 = vld [vmem:[%s2879_s29 + $0x200] sm:$0xff] }
  0x54   : > { %1121 = vmatmul.mubr.f32.vlgmr.msra.gmra.mrb[0].mxu0 %v306_v18  ;;  %2292 = vmatpush1.bf16.msra.mxu1 %v2291_v15  ;;  %v338_v15 = vld [vmem:[%s2879_s29 + $0x120] sm:$0xff]  ;;  %v661_v18 = vld [vmem:[%s2771_s24 + $0x6b8] sm:$0xff]  ;;  %v2309_v25 = vpack.c.bf16 %v533_v14, %v531_v13  ;;  %v540_v60 = vld [vmem:[%s2771_s24 + $0x2f0] sm:$0xff] }
  0x55   : > { %2420 = vmatpush1.bf16.msra.mxu0 %v2935_v19  ;;  %804 = vmatprep.mubr.f32.mxu1 %v312_v22  ;;  %v530_v22 = vld [vmem:[%s2771_s24 + $0x2a0] sm:$0xff]  ;;  %v668_v0 = vld [vmem:[%s2771_s24 + $0x6f0] sm:$0xff]  ;;  %v543_v4 = vld [vmem:[%s2771_s24 + $0x308] sm:$0xff] }
  0x56   : > { %1126 = vmatprep.mubr.f32.mxu0 %v316_v26  ;;  %2294 = vmatprep.subr.bf16.mxu1 %v2293_v23  ;;  %v532_v23 = vld [vmem:[%s2771_s24 + $0x2b0] sm:$0xff]  ;;  %v658_v26 = vld [vmem:[%s2771_s24 + $0x6a0] sm:$0xff]  ;;  %v545_v5 = vld [vmem:[%s2771_s24 + $0x318] sm:$0xff] }
  0x57   : > { %805 = vmatmul.mubr.f32.gmra.mrb[2].mxu1 %v311_v30  ;;  %2422 = vmatprep.subr.bf16.mxu0 %v2944_v27  ;;  %v3016_v30 = vpack.c.bf16 %v661_v18, %v659_v17  ;;  %v370_v1 = vld [vmem:[%s2879_s29 + $0x220] sm:$0xff]  ;;  %v671_v8 = vld [vmem:[%s2771_s24 + $0x708] sm:$0xff]  ;;  %v673_v10 = vld [vmem:[%s2771_s24 + $0x718] sm:$0xff]  ;;  %v2321_v17 = vpack.c.bf16 %v545_v5, %v543_v4 }
  0x58   : > { %1127 = vmatmul.mubr.f32.gmra.mrb[2].mxu0 %v315_v34  ;;  %2296 = vmatpush1.bf16.msra.mxu1 %v2295_v31  ;;  %v535_v31 = vld [vmem:[%s2771_s24 + $0x2c8] sm:$0xff]  ;;  %v2311_v34 = vpack.c.bf16 %v532_v23, %v530_v22  ;;  %v542_v14 = vld [vmem:[%s2771_s24 + $0x300] sm:$0xff]  ;;  %v3070_v23 = vpack.c.bf16 %v673_v10, %v671_v8  ;;  %v548_v36 = vld [vmem:[%s2771_s24 + $0x330] sm:$0xff] }
  0x59   : > { %2424 = vmatpush1.bf16.msra.mxu0 %v2953_v35  ;;  %810 = vmatprep.mubr.f32.mxu1 %v321_v38  ;;  %v351_v38 = vld [vmem:[%s2879_s29 + $0x188] sm:$0xff]  ;;  %v2313_v44 = vpack.c.bf16 %v537_v32, %v535_v31  ;;  %v670_v18 = vld [vmem:[%s2771_s24 + $0x700] sm:$0xff]  ;;  %v677_v31 = vld [vmem:[%s2771_s24 + $0x738] sm:$0xff] }
  0x5a   : > { %1132 = vmatprep.mubr.f32.mxu0 %v325_v42  ;;  %2298 = vmatprep.subr.bf16.mxu1 %v2297_v39  ;;  %v3025_v39 = vpack.c.bf16 %v660_v28, %v658_v26  ;;  %v357_v42 = vld [vmem:[%s2879_s29 + $0x1b8] sm:$0xff]  ;;  %v379_v22 = vld [vmem:[%s2879_s29 + $0x268] sm:$0xff]  ;;  %v374_v26 = vld [vmem:[%s2879_s29 + $0x240] sm:$0xff] }
  0x5b   : > { %811 = vmatmul.mubr.f32.gmra.mrb[4].mxu1 %v320_v46  ;;  %2426 = vmatprep.subr.bf16.mxu0 %v2962_v43  ;;  %v664_v46 = vld [vmem:[%s2771_s24 + $0x6d0] sm:$0xff]  ;;  %v378_v32 = vld [vmem:[%s2879_s29 + $0x260] sm:$0xff]  ;;  %v557_v4 = vld [vmem:[%s2771_s24 + $0x378] sm:$0xff] }
  0x5c   : > { %1133 = vmatmul.mubr.f32.gmra.mrb[4].mxu0 %v324_v50  ;;  %2300 = vmatpush1.bf16.msra.mxu1 %v2299_v47  ;;  %v361_v47 = vld [vmem:[%s2879_s29 + $0x1d8] sm:$0xff]  ;;  %v3043_v57 = vpack.c.bf16 %v664_v46, %v662_v45  ;;  %v384_v37 = vld [vmem:[%s2879_s29 + $0x290] sm:$0xff]  ;;  %v674_v40 = vld [vmem:[%s2771_s24 + $0x720] sm:$0xff] }
  0x5d   : > { %2428 = vmatpush1.bf16.msra.mxu0 %v2971_v51  ;;  %816 = vmatprep.mubr.f32.mxu1 %v330_v54  ;;  %v541_v50 = vld [vmem:[%s2771_s24 + $0x2f8] sm:$0xff]  ;;  %v667_v54 = vld [vmem:[%s2771_s24 + $0x6e8] sm:$0xff]  ;;  %v676_v41 = vld [vmem:[%s2771_s24 + $0x730] sm:$0xff] }
  0x5e   : > { %1138 = vmatprep.mubr.f32.mxu0 %v334_v58  ;;  %2302 = vmatprep.subr.bf16.mxu1 %v2301_v55  ;;  %v669_v55 = vld [vmem:[%s2771_s24 + $0x6f8] sm:$0xff]  ;;  %v538_v58 = vld [vmem:[%s2771_s24 + $0x2e0] sm:$0xff]  ;;  %v551_v45 = vld [vmem:[%s2771_s24 + $0x348] sm:$0xff] }
  0x5f   : > { %817 = vmatmul.mubr.f32.gmra.mrb[6].mxu1 %v329_v62  ;;  %2430 = vmatprep.subr.bf16.mxu0 %v2980_v59  ;;  %v2317_v62 = vpack.c.bf16 %v541_v50, %v539_v49  ;;  %v553_v46 = vld [vmem:[%s2771_s24 + $0x358] sm:$0xff]  ;;  %v679_v50 = vld [vmem:[%s2771_s24 + $0x748] sm:$0xff]  ;;  %v392_v5 = vld [vmem:[%s2879_s29 + $0x2d0] sm:$0xff] }
  0x60   : > { %1139 = vmatmul.mubr.f32.gmra.mrb[6].mxu0 %v333_v2  ;;  %2304 = vmatpush1.bf16.msra.mxu1 %v2303_v63  ;;  %v666_v63 = vld [vmem:[%s2771_s24 + $0x6e0] sm:$0xff]  ;;  %v3052_v2 = vpack.c.bf16 %v669_v55, %v667_v54  ;;  %v3097_v54 = vpack.c.bf16 %v676_v41, %v674_v40  ;;  %v685_v8 = vld [vmem:[%s2771_s24 + $0x778] sm:$0xff]  ;;  %v396_v10 = vld [vmem:[%s2879_s29 + $0x2f0] sm:$0xff] }
  0x61   : > { %2432 = vmatpush1.bf16.msra.mxu0 %v2989_v3  ;;  %822 = vmatprep.mubr.f32.mxu1 %v339_v6  ;;  %v365_v6 = vld [vmem:[%s2879_s29 + $0x1f8] sm:$0xff]  ;;  %v3061_v13 = vpack.c.bf16 %v668_v0, %v666_v63  ;;  %v550_v55 = vld [vmem:[%s2771_s24 + $0x340] sm:$0xff]  ;;  %v411_v40 = vld [vmem:[%s2879_s29 + $0x368] sm:$0xff] }
  0x62   : > { %1144 = vmatprep.mubr.f32.mxu0 %v343_v11  ;;  %2306 = vmatprep.subr.bf16.mxu1 %v2305_v7  ;;  %v2319_v7 = vpack.c.bf16 %v540_v60, %v538_v58  ;;  %v369_v11 = vld [vmem:[%s2879_s29 + $0x218] sm:$0xff]  ;;  %v2329_v60 = vpack.c.bf16 %v553_v46, %v551_v45  ;;  %v688_v45 = vld [vmem:[%s2771_s24 + $0x790] sm:$0xff]  ;;  %v415_v46 = vld [vmem:[%s2879_s29 + $0x388] sm:$0xff] }
  0x63   : > { %823 = vmatmul.mubr.f32.gmra.mrb[8].mxu1 %v338_v15  ;;  %2434 = vmatprep.subr.bf16.mxu0 %v2998_v12  ;;  %v544_v15 = vld [vmem:[%s2771_s24 + $0x310] sm:$0xff]  ;;  %v393_v58 = vld [vmem:[%s2879_s29 + $0x2d8] sm:$0xff] }
  0x64   : > { %1145 = vmatmul.mubr.f32.gmra.mrb[8].mxu0 %v342_v20  ;;  %2308 = vmatpush1.bf16.msra.mxu1 %v2307_v16  ;;  %v375_v16 = vld [vmem:[%s2879_s29 + $0x248] sm:$0xff]  ;;  %v672_v20 = vld [vmem:[%s2771_s24 + $0x710] sm:$0xff]  ;;  %v2323_v28 = vpack.c.bf16 %v544_v15, %v542_v14  ;;  %v397_v63 = vld [vmem:[%s2879_s29 + $0x2f8] sm:$0xff] }
  0x65   : > { %2436 = vmatpush1.bf16.msra.mxu0 %v3007_v21  ;;  %828 = vmatprep.mubr.f32.mxu1 %v348_v24  ;;  %v547_v24 = vld [vmem:[%s2771_s24 + $0x328] sm:$0xff]  ;;  %v554_v14 = vld [vmem:[%s2771_s24 + $0x360] sm:$0xff]  ;;  %v556_v15 = vld [vmem:[%s2771_s24 + $0x370] sm:$0xff] }
  0x66   : > { %1150 = vmatprep.mubr.f32.mxu0 %v352_v29  ;;  %2310 = vmatprep.subr.bf16.mxu1 %v2309_v25  ;;  %v549_v25 = vld [vmem:[%s2771_s24 + $0x338] sm:$0xff]  ;;  %v675_v29 = vld [vmem:[%s2771_s24 + $0x728] sm:$0xff] }
  0x67   : > { %829 = vmatmul.mubr.f32.gmra.mrb[10].mxu1 %v347_v33  ;;  %2438 = vmatprep.subr.bf16.mxu0 %v3016_v30  ;;  %v3079_v33 = vpack.c.bf16 %v672_v20, %v670_v18  ;;  %v682_v18 = vld [vmem:[%s2771_s24 + $0x760] sm:$0xff]  ;;  %v684_v20 = vld [vmem:[%s2771_s24 + $0x770] sm:$0xff] }
  0x68   : > { %1151 = vmatmul.mubr.f32.gmra.mrb[10].mxu0 %v351_v38  ;;  %2312 = vmatpush1.bf16.msra.mxu1 %v2311_v34  ;;  %v546_v34 = vld [vmem:[%s2771_s24 + $0x320] sm:$0xff]  ;;  %v2325_v38 = vpack.c.bf16 %v549_v25, %v547_v24  ;;  %v559_v25 = vld [vmem:[%s2771_s24 + $0x388] sm:$0xff] }
  0x69   : > { %2440 = vmatpush1.bf16.msra.mxu0 %v3025_v39  ;;  %834 = vmatprep.mubr.f32.mxu1 %v357_v42  ;;  %v388_v42 = vld [vmem:[%s2879_s29 + $0x2b0] sm:$0xff]  ;;  %v2327_v49 = vpack.c.bf16 %v548_v36, %v546_v34  ;;  %v405_v34 = vld [vmem:[%s2879_s29 + $0x338] sm:$0xff]  ;;  %v3133_v36 = vpack.c.bf16 %v684_v20, %v682_v18  ;;  %v423_v18 = vld [vmem:[%s2879_s29 + $0x3c8] sm:$0xff] }
  0x6a   : > { %1156 = vmatprep.mubr.f32.mxu0 %v361_v47  ;;  %2314 = vmatprep.subr.bf16.mxu1 %v2313_v44  ;;  %v3088_v44 = vpack.c.bf16 %v677_v31, %v675_v29  ;;  %v383_v47 = vld [vmem:[%s2879_s29 + $0x288] sm:$0xff]  ;;  %v2335_v29 = vpack.c.bf16 %v556_v15, %v554_v14 }
  0x6b   : > { %835 = vmatmul.mubr.f32.gmra.mrb[12].mxu1 %v356_v52  ;;  %2442 = vmatprep.subr.bf16.mxu0 %v3034_v48  ;;  %v681_v52 = vld [vmem:[%s2771_s24 + $0x758] sm:$0xff]  ;;  %v687_v31 = vld [vmem:[%s2771_s24 + $0x788] sm:$0xff] }
  0x6c   : > { %1157 = vmatmul.mubr.f32.gmra.mrb[12].mxu0 %v360_v56  ;;  %2316 = vmatpush1.bf16.msra.mxu1 %v2315_v53  ;;  %v387_v53 = vld [vmem:[%s2879_s29 + $0x2a8] sm:$0xff]  ;;  %v552_v56 = vld [vmem:[%s2771_s24 + $0x350] sm:$0xff]  ;;  %v3106_v0 = vpack.c.bf16 %v681_v52, %v679_v50  ;;  %v565_v50 = vld [vmem:[%s2771_s24 + $0x3b8] sm:$0xff] }
  0x6d   : > { %2444 = vmatpush1.bf16.msra.mxu0 %v3043_v57  ;;  %840 = vmatprep.mubr.f32.mxu1 %v366_v61  ;;  %v678_v61 = vld [vmem:[%s2771_s24 + $0x740] sm:$0xff]  ;;  %v419_v14 = vld [vmem:[%s2879_s29 + $0x3a8] sm:$0xff] }
  0x6e   : > { %1162 = vmatprep.mubr.f32.mxu0 %v370_v1  ;;  %2318 = vmatprep.subr.bf16.mxu1 %v2317_v62  ;;  %v680_v62 = vld [vmem:[%s2771_s24 + $0x750] sm:$0xff]  ;;  %v555_v1 = vld [vmem:[%s2771_s24 + $0x368] sm:$0xff]  ;;  %v410_v52 = vld [vmem:[%s2879_s29 + $0x360] sm:$0xff] }
  0x6f   : > { %841 = vmatmul.mubr.f32.gmra.mrb[14].mxu1 %v365_v6  ;;  %2446 = vmatprep.subr.bf16.mxu0 %v3052_v2  ;;  %v2331_v6 = vpack.c.bf16 %v552_v56, %v550_v55  ;;  %v691_v55 = vld [vmem:[%s2771_s24 + $0x7a8] sm:$0xff]  ;;  %v693_v56 = vld [vmem:[%s2771_s24 + $0x7b8] sm:$0xff] }
  0x70   : > { %1163 = vmatmul.mubr.f32.gmra.mrb[14].mxu0 %v369_v11  ;;  %2320 = vmatpush1.bf16.msra.mxu1 %v2319_v7  ;;  %v683_v7 = vld [vmem:[%s2771_s24 + $0x768] sm:$0xff]  ;;  %v3115_v11 = vpack.c.bf16 %v680_v62, %v678_v61  ;;  %v562_v61 = vld [vmem:[%s2771_s24 + $0x3a0] sm:$0xff]  ;;  %v564_v62 = vld [vmem:[%s2771_s24 + $0x3b0] sm:$0xff] }
  0x71   : > { %2448 = vmatpush1.bf16.msra.mxu0 %v3061_v13  ;;  %846 = vmatprep.mubr.f32.mxu1 %v375_v16  ;;  %v402_v16 = vld [vmem:[%s2879_s29 + $0x320] sm:$0xff]  ;;  %v3124_v24 = vpack.c.bf16 %v685_v8, %v683_v7  ;;  %v3160_v7 = vpack.c.bf16 %v693_v56, %v691_v55  ;;  %v567_v8 = vld [vmem:[%s2771_s24 + $0x3c8] sm:$0xff]  ;;  %v2343_v15 = vpack.c.bf16 %v564_v62, %v562_v61 }
  0x72   : > { %1168 = vmatprep.mubr.f32.mxu0 %v379_v22  ;;  %2322 = vmatprep.subr.bf16.mxu1 %v2321_v17  ;;  %v2333_v17 = vpack.c.bf16 %v557_v4, %v555_v1  ;;  %v406_v22 = vld [vmem:[%s2879_s29 + $0x340] sm:$0xff] }
  0x73   : > { %847 = vmatmul.mubr.f32.gmra.mrb[16].mxu1 %v374_v26  ;;  %2450 = vmatprep.subr.bf16.mxu0 %v3070_v23  ;;  %v561_v26 = vld [vmem:[%s2771_s24 + $0x398] sm:$0xff]  ;;  %v690_v4 = vld [vmem:[%s2771_s24 + $0x7a0] sm:$0xff] }
  0x74   : > { %1169 = vmatmul.mubr.f32.gmra.mrb[16].mxu0 %v378_v32  ;;  %2324 = vmatpush1.bf16.msra.mxu1 %v2323_v28  ;;  %v401_v28 = vld [vmem:[%s2879_s29 + $0x318] sm:$0xff]  ;;  %v2337_v41 = vpack.c.bf16 %v561_v26, %v559_v25  ;;  %v568_v25 = vld [vmem:[%s2771_s24 + $0x3d0] sm:$0xff]  ;;  %v698_v56 = vld [vmem:[%s2771_s24 + $0x7e0] sm:$0xff] }
  0x75   : > { %2452 = vmatpush1.bf16.msra.mxu0 %v3079_v33  ;;  %852 = vmatprep.mubr.f32.mxu1 %v384_v37  ;;  %v689_v32 = vld [vmem:[%s2771_s24 + $0x798] sm:$0xff]  ;;  %v558_v37 = vld [vmem:[%s2771_s24 + $0x380] sm:$0xff] }
  0x76   : > { %1174 = vmatprep.mubr.f32.mxu0 %v388_v42  ;;  %2326 = vmatprep.subr.bf16.mxu1 %v2325_v38  ;;  %v560_v38 = vld [vmem:[%s2771_s24 + $0x390] sm:$0xff]  ;;  %v686_v42 = vld [vmem:[%s2771_s24 + $0x780] sm:$0xff]  ;;  %v429_v26 = vld [vmem:[%s2879_s29 + $0x3f8] sm:$0xff] }
  0x77   : > { %853 = vmatmul.mubr.f32.gmra.mrb[18].mxu1 %v383_v47  ;;  %2454 = vmatprep.subr.bf16.mxu0 %v3088_v44  ;;  %v3142_v47 = vpack.c.bf16 %v689_v32, %v687_v31  ;;  %v696_v31 = vld [vmem:[%s2771_s24 + $0x7d0] sm:$0xff]  ;;  %v433_v32 = vld [vmem:[%s2879_s29 + $0x418] sm:$0xff]  ;;  %v442_v61 = vld [vmem:[%s2879_s29 + $0x460] sm:$0xff] }
  0x78   : > { %1175 = vmatmul.mubr.f32.gmra.mrb[18].mxu0 %v387_v53  ;;  %2328 = vmatpush1.bf16.msra.mxu1 %v2327_v49  ;;  %v563_v49 = vld [vmem:[%s2771_s24 + $0x3a8] sm:$0xff]  ;;  %v2339_v53 = vpack.c.bf16 %v560_v38, %v558_v37  ;;  %v573_v38 = vld [vmem:[%s2771_s24 + $0x3f8] sm:$0xff] }
  0x79   : > { %2456 = vmatpush1.bf16.msra.mxu0 %v3097_v54  ;;  %858 = vmatprep.mubr.f32.mxu1 %v393_v58  ;;  %v414_v58 = vld [vmem:[%s2879_s29 + $0x380] sm:$0xff]  ;;  %v2341_v1 = vpack.c.bf16 %v565_v50, %v563_v49  ;;  %v571_v37 = vld [vmem:[%s2771_s24 + $0x3e8] sm:$0xff] }
  0x7a   : > { %1180 = vmatprep.mubr.f32.mxu0 %v397_v63  ;;  %2330 = vmatprep.subr.bf16.mxu1 %v2329_v60  ;;  %v3151_v60 = vpack.c.bf16 %v688_v45, %v686_v42  ;;  %v420_v63 = vld [vmem:[%s2879_s29 + $0x3b0] sm:$0xff]  ;;  %v699_v42 = vld [vmem:[%s2771_s24 + $0x7e8] sm:$0xff]  ;;  %v701_v45 = vld [vmem:[%s2771_s24 + $0x7f8] sm:$0xff]  ;;  %v2349_v55 = vpack.c.bf16 %v573_v38, %v571_v37 }
  0x7b   : > { %859 = vmatmul.mubr.f32.gmra.mrb[20].mxu1 %v392_v5  ;;  %2458 = vmatprep.subr.bf16.mxu0 %v3106_v0  ;;  %v692_v5 = vld [vmem:[%s2771_s24 + $0x7b0] sm:$0xff]  ;;  %v570_v50 = vld [vmem:[%s2771_s24 + $0x3e0] sm:$0xff]  ;;  %v3196_v62 = vpack.c.bf16 %v701_v45, %v699_v42  ;;  %v713_v42 = vld [vmem:[%s2771_s24 + $0x858] sm:$0xff] }
  0x7c   : > { %1181 = vmatmul.mubr.f32.gmra.mrb[20].mxu0 %v396_v10  ;;  %2332 = vmatpush1.bf16.msra.mxu1 %v2331_v6  ;;  %v424_v6 = vld [vmem:[%s2879_s29 + $0x3d0] sm:$0xff]  ;;  %v569_v10 = vld [vmem:[%s2771_s24 + $0x3d8] sm:$0xff]  ;;  %v3169_v20 = vpack.c.bf16 %v692_v5, %v690_v4  ;;  %v703_v4 = vld [vmem:[%s2771_s24 + $0x808] sm:$0xff] }
  0x7d   : > { %2460 = vmatpush1.bf16.msra.mxu0 %v3115_v11  ;;  %864 = vmatprep.mubr.f32.mxu1 %v402_v16  ;;  %v695_v16 = vld [vmem:[%s2771_s24 + $0x7c8] sm:$0xff]  ;;  %v705_v5 = vld [vmem:[%s2771_s24 + $0x818] sm:$0xff]  ;;  %v318_v37 = vld [vmem:[%s2879_s29 + $0x80] sm:$0xff] }
  0x7e   : > { %1186 = vmatprep.mubr.f32.mxu0 %v406_v22  ;;  %2334 = vmatprep.subr.bf16.mxu1 %v2333_v17  ;;  %v697_v17 = vld [vmem:[%s2771_s24 + $0x7d8] sm:$0xff]  ;;  %v566_v22 = vld [vmem:[%s2771_s24 + $0x3c0] sm:$0xff] }
  0x7f   : > { %865 = vmatmul.mubr.f32.gmra.mrb[22].mxu1 %v401_v28  ;;  %2462 = vmatprep.subr.bf16.mxu0 %v3124_v24  ;;  %v2345_v28 = vpack.c.bf16 %v569_v10, %v567_v8  ;;  %v305_v10 = vld [vmem:[%s2879_s29 + $0x18] sm:$0xff] }
  0x80   : > { %1187 = vmatmul.mubr.f32.gmra.mrb[22].mxu0 %v405_v34  ;;  %2336 = vmatpush1.bf16.msra.mxu1 %v2335_v29  ;;  %v694_v29 = vld [vmem:[%s2771_s24 + $0x7c0] sm:$0xff]  ;;  %v3178_v34 = vpack.c.bf16 %v697_v17, %v695_v16  ;;  %v309_v16 = vld [vmem:[%s2879_s29 + $0x38] sm:$0xff]  ;;  %v2481_v17 = vpack.c.bf16 %v705_v5, %v703_v4  ;;  %v716_v4 = vld [vmem:[%s2771_s24 + $0x870] sm:$0xff] }
  0x81   : > { %2464 = vmatpush1.bf16.msra.mxu0 %v3133_v36  ;;  %870 = vmatprep.mubr.f32.mxu1 %v411_v40  ;;  %v428_v40 = vld [vmem:[%s2879_s29 + $0x3f0] sm:$0xff]  ;;  %v3187_v49 = vpack.c.bf16 %v696_v31, %v694_v29  ;;  %v314_v29 = vld [vmem:[%s2879_s29 + $0x60] sm:$0xff] }
  0x82   : > { %1192 = vmatprep.mubr.f32.mxu0 %v415_v46  ;;  %2338 = vmatprep.subr.bf16.mxu1 %v2337_v41  ;;  %v2347_v41 = vpack.c.bf16 %v568_v25, %v566_v22  ;;  %v432_v46 = vld [vmem:[%s2879_s29 + $0x410] sm:$0xff]  ;;  %v707_v22 = vld [vmem:[%s2771_s24 + $0x828] sm:$0xff]  ;;  %v709_v25 = vld [vmem:[%s2771_s24 + $0x838] sm:$0xff] }
  0x83   : > { %871 = vmatmul.mubr.f32.gmra.mrb[24].mxu1 %v410_v52  ;;  %2466 = vmatprep.subr.bf16.mxu0 %v3142_v47  ;;  %v572_v52 = vld [vmem:[%s2771_s24 + $0x3f0] sm:$0xff]  ;;  %v706_v31 = vld [vmem:[%s2771_s24 + $0x820] sm:$0xff]  ;;  %v2485_v38 = vpack.c.bf16 %v709_v25, %v707_v22 }
  0x84   : > { %1193 = vmatmul.mubr.f32.gmra.mrb[24].mxu0 %v414_v58  ;;  %2340 = vmatpush1.bf16.msra.mxu1 %v2339_v53  ;;  %v438_v53 = vld [vmem:[%s2879_s29 + $0x440] sm:$0xff]  ;;  %v700_v58 = vld [vmem:[%s2771_s24 + $0x7f0] sm:$0xff] }
  0x85   : > { %2468 = vmatpush1.bf16.msra.mxu0 %v3151_v60  ;;  %876 = vmatprep.mubr.f32.mxu1 %v420_v63  ;;  %v437_v63 = vld [vmem:[%s2879_s29 + $0x438] sm:$0xff]  ;;  %v3203_v8 = vpack.c.bf16 %v700_v58, %v698_v56  ;;  %v715_v56 = vld [vmem:[%s2771_s24 + $0x868] sm:$0xff]  ;;  %v340_v25 = vld [vmem:[%s2879_s29 + $0x130] sm:$0xff] }
  0x86   : > { %1198 = vmatprep.mubr.f32.mxu0 %v424_v6  ;;  %2342 = vmatprep.subr.bf16.mxu1 %v2341_v1  ;;  %v2351_v1 = vpack.c.bf16 %v572_v52, %v570_v50  ;;  %v441_v6 = vld [vmem:[%s2879_s29 + $0x458] sm:$0xff]  ;;  %v710_v50 = vld [vmem:[%s2771_s24 + $0x840] sm:$0xff]  ;;  %v712_v52 = vld [vmem:[%s2771_s24 + $0x850] sm:$0xff] }
  0x87   : > { %877 = vmatmul.mubr.f32.gmra.mrb[26].mxu1 %v419_v14  ;;  %2470 = vmatprep.subr.bf16.mxu0 %v3160_v7  ;;  %v702_v14 = vld [vmem:[%s2771_s24 + $0x800] sm:$0xff]  ;;  %v717_v58 = vld [vmem:[%s2771_s24 + $0x878] sm:$0xff] }
  0x88   : > { %1199 = vmatmul.mubr.f32.gmra.mrb[26].mxu0 %v423_v18  ;;  %2344 = vmatpush1.bf16.msra.mxu1 %v2343_v15  ;;  %v704_v15 = vld [vmem:[%s2771_s24 + $0x810] sm:$0xff]  ;;  %v2493_v5 = vpack.c.bf16 %v717_v58, %v715_v56 }
  0x89   : > { %2472 = vmatpush1.bf16.msra.mxu0 %v3169_v20  ;;  %882 = vmatprep.mubr.f32.mxu1 %v429_v26  ;;  %v304_v18 = vld [vmem:[%s2879_s29 + $0x10] sm:$0xff] }
  0x8a   : > { %1204 = vmatprep.mubr.f32.mxu0 %v433_v32  ;;  %2346 = vmatprep.subr.bf16.mxu1 %v2345_v28  ;;  %v308_v26 = vld [vmem:[%s2879_s29 + $0x30] sm:$0xff]  ;;  %v2483_v28 = vpack.c.bf16 %v704_v15, %v702_v14  ;;  %v721_v14 = vld [vmem:[%s2771_s24 + $0x898] sm:$0xff] }
  0x8b   : > { %883 = vmatmul.mubr.f32.gmra.mrb[28].mxu1 %v428_v40  ;;  %2474 = vmatprep.subr.bf16.mxu0 %v3178_v34  ;;  %v708_v32 = vld [vmem:[%s2771_s24 + $0x830] sm:$0xff]  ;;  %v313_v40 = vld [vmem:[%s2879_s29 + $0x58] sm:$0xff] }
  0x8c   : > { %1205 = vmatmul.mubr.f32.gmra.mrb[28].mxu0 %v432_v46  ;;  %2348 = vmatpush1.bf16.msra.mxu1 %v2347_v41  ;;  %v711_v41 = vld [vmem:[%s2771_s24 + $0x848] sm:$0xff]  ;;  %v2487_v45 = vpack.c.bf16 %v708_v32, %v706_v31  ;;  %v350_v31 = vld [vmem:[%s2879_s29 + $0x180] sm:$0xff]  ;;  %v368_v58 = vld [vmem:[%s2879_s29 + $0x210] sm:$0xff] }
  0x8d   : > { %2476 = vmatpush1.bf16.msra.mxu0 %v3187_v49  ;;  %888 = vmatprep.mubr.f32.mxu1 %v438_v53  ;;  %v323_v46 = vld [vmem:[%s2879_s29 + $0xa8] sm:$0xff]  ;;  %v2489_v53 = vpack.c.bf16 %v713_v42, %v711_v41  ;;  %v722_v32 = vld [vmem:[%s2771_s24 + $0x8a0] sm:$0xff]  ;;  %v729_v42 = vld [vmem:[%s2771_s24 + $0x8d8] sm:$0xff] }
  0x8e   : > { %1210 = vmatprep.mubr.f32.mxu0 %v442_v61  ;;  %2350 = vmatprep.subr.bf16.mxu1 %v2349_v55  ;;  %v322_v55 = vld [vmem:[%s2879_s29 + $0xa0] sm:$0xff]  ;;  %v2491_v61 = vpack.c.bf16 %v712_v52, %v710_v50  ;;  %v727_v41 = vld [vmem:[%s2771_s24 + $0x8c8] sm:$0xff]  ;;  %v728_v50 = vld [vmem:[%s2771_s24 + $0x8d0] sm:$0xff] }
  0x8f   : > { %889 = vmatmul.mubr.f32.gmra.mrb[30].mxu1 %v437_v63  ;;  %2478 = vmatprep.subr.bf16.mxu0 %v3196_v62  ;;  %v332_v63 = vld [vmem:[%s2879_s29 + $0xf0] sm:$0xff]  ;;  %v2505_v52 = vpack.c.bf16 %v729_v42, %v727_v41  ;;  %v427_v41 = vld [vmem:[%s2879_s29 + $0x3e8] sm:$0xff] }
  0x90   : > { %1211 = vmatmul.mubr.f32.gmra.mrb[30].mxu0 %v441_v6  ;;  %2352 = vmatpush1.bf16.msra.mxu1 %v2351_v1  ;;  %v714_v1 = vld [vmem:[%s2771_s24 + $0x860] sm:$0xff]  ;;  %v331_v6 = vld [vmem:[%s2879_s29 + $0xe8] sm:$0xff] }
  0x91   : > { %2480 = vmatpush1.bf16.msra.mxu0 %v3203_v8  ;;  %959 = vmatprep.mubr.f32.mxu1 %v305_v10  ;;  %v719_v10 = vld [vmem:[%s2771_s24 + $0x888] sm:$0xff]  ;;  %v2495_v15 = vpack.c.bf16 %v716_v4, %v714_v1 }
  0x92   : > { %1281 = vmatprep.mubr.f32.mxu0 %v309_v16  ;;  %2513 = vmatprep.subr.bf16.mxu1 %v2925_v9  ;;  %v317_v9 = vld [vmem:[%s2879_s29 + $0x78] sm:$0xff]  ;;  %v2497_v22 = vpack.c.bf16 %v721_v14, %v719_v10  ;;  %v367_v1 = vld [vmem:[%s2879_s29 + $0x208] sm:$0xff] }
  0x93   : > { %960 = vmatmul.mubr.f32.vlgmr.msra.gmra.mrb[0].mxu1 %v304_v18  ;;  %2482 = vmatprep.subr.bf16.mxu0 %v2481_v17  ;;  %v341_v16 = vld [vmem:[%s2879_s29 + $0x138] sm:$0xff]  ;;  %v718_v17 = vld [vmem:[%s2771_s24 + $0x880] sm:$0xff]  ;;  %v720_v18 = vld [vmem:[%s2771_s24 + $0x890] sm:$0xff] }
  0x94   : > { %1282 = vmatmul.mubr.f32.vlgmr.msra.gmra.mrb[0].mxu0 %v308_v26  ;;  %2529 = vmatpush1.bf16.msra.mxu1 %v2935_v19  ;;  %v327_v19 = vld [vmem:[%s2879_s29 + $0xc8] sm:$0xff]  ;;  %v385_v10 = vld [vmem:[%s2879_s29 + $0x298] sm:$0xff] }
  0x95   : > { %2484 = vmatpush1.bf16.msra.mxu0 %v2483_v28  ;;  %965 = vmatprep.mubr.f32.mxu1 %v314_v29  ;;  %v723_v26 = vld [vmem:[%s2771_s24 + $0x8a8] sm:$0xff]  ;;  %v725_v28 = vld [vmem:[%s2771_s24 + $0x8b8] sm:$0xff]  ;;  %v2499_v29 = vpack.c.bf16 %v720_v18, %v718_v17  ;;  %v440_v18 = vld [vmem:[%s2879_s29 + $0x450] sm:$0xff] }
  0x96   : > { %1287 = vmatprep.mubr.f32.mxu0 %v318_v37  ;;  %2514 = vmatprep.subr.bf16.mxu1 %v2944_v27  ;;  %v326_v27 = vld [vmem:[%s2879_s29 + $0xc0] sm:$0xff]  ;;  %v724_v37 = vld [vmem:[%s2771_s24 + $0x8b0] sm:$0xff]  ;;  %v371_v4 = vld [vmem:[%s2879_s29 + $0x228] sm:$0xff] }
  0x97   : > { %966 = vmatmul.mubr.f32.gmra.mrb[2].mxu1 %v313_v40  ;;  %2486 = vmatprep.subr.bf16.mxu0 %v2485_v38  ;;  %v2501_v38 = vpack.c.bf16 %v725_v28, %v723_v26  ;;  %v349_v40 = vld [vmem:[%s2879_s29 + $0x178] sm:$0xff]  ;;  %v395_v14 = vld [vmem:[%s2879_s29 + $0x2e8] sm:$0xff]  ;;  %v398_v26 = vld [vmem:[%s2879_s29 + $0x300] sm:$0xff] }
  0x98   : > { %1288 = vmatmul.mubr.f32.gmra.mrb[2].mxu0 %v317_v9  ;;  %2530 = vmatpush1.bf16.msra.mxu1 %v2953_v35  ;;  %v336_v35 = vld [vmem:[%s2879_s29 + $0x110] sm:$0xff]  ;;  %v2503_v9 = vpack.c.bf16 %v724_v37, %v722_v32  ;;  %v431_v17 = vld [vmem:[%s2879_s29 + $0x408] sm:$0xff]  ;;  %v417_v32 = vld [vmem:[%s2879_s29 + $0x398] sm:$0xff] }
  0x99   : > { %2488 = vmatpush1.bf16.msra.mxu0 %v2487_v45  ;;  %971 = vmatprep.mubr.f32.mxu1 %v323_v46  ;;  %v359_v45 = vld [vmem:[%s2879_s29 + $0x1c8] sm:$0xff]  ;;  %v726_v46 = vld [vmem:[%s2771_s24 + $0x8c0] sm:$0xff]  ;;  %v400_v28 = vld [vmem:[%s2879_s29 + $0x310] sm:$0xff] }
  0x9a   : > { %1293 = vmatprep.mubr.f32.mxu0 %v327_v19  ;;  %2515 = vmatprep.subr.bf16.mxu1 %v2962_v43  ;;  %v335_v43 = vld [vmem:[%s2879_s29 + $0x108] sm:$0xff]  ;;  %v358_v19 = vld [vmem:[%s2879_s29 + $0x1c0] sm:$0xff]  ;;  %v2507_v56 = vpack.c.bf16 %v728_v50, %v726_v46  ;;  %v416_v37 = vld [vmem:[%s2879_s29 + $0x390] sm:$0xff] }
  0x9b   : > { %972 = vmatmul.mubr.f32.gmra.mrb[4].mxu1 %v322_v55  ;;  %2490 = vmatprep.subr.bf16.mxu0 %v2489_v53  ;;  %v731_v53 = vld [vmem:[%s2771_s24 + $0x8e8] sm:$0xff]  ;;  %v733_v55 = vld [vmem:[%s2771_s24 + $0x8f8] sm:$0xff] }
  0x9c   : > { %1294 = vmatmul.mubr.f32.gmra.mrb[4].mxu0 %v326_v27  ;;  %2531 = vmatpush1.bf16.msra.mxu1 %v2971_v51  ;;  %v345_v51 = vld [vmem:[%s2879_s29 + $0x158] sm:$0xff]  ;;  %v730_v27 = vld [vmem:[%s2771_s24 + $0x8e0] sm:$0xff]  ;;  %v435_v42 = vld [vmem:[%s2879_s29 + $0x428] sm:$0xff] }
  0x9d   : > { %2492 = vmatpush1.bf16.msra.mxu0 %v2491_v61  ;;  %977 = vmatprep.mubr.f32.mxu1 %v332_v63  ;;  %v732_v61 = vld [vmem:[%s2771_s24 + $0x8f0] sm:$0xff]  ;;  %v443_v46 = vld [vmem:[%s2879_s29 + $0x468] sm:$0xff]  ;;  %v445_v50 = vld [vmem:[%s2879_s29 + $0x478] sm:$0xff] }
  0x9e   : > { %1299 = vmatprep.mubr.f32.mxu0 %v336_v35  ;;  %2516 = vmatprep.subr.bf16.mxu1 %v2980_v59  ;;  %v344_v59 = vld [vmem:[%s2879_s29 + $0x150] sm:$0xff]  ;;  %v2511_v35 = vpack.c.bf16 %v732_v61, %v730_v27 }
  0x9f   : > { %978 = vmatmul.mubr.f32.gmra.mrb[6].mxu1 %v331_v6  ;;  %2494 = vmatprep.subr.bf16.mxu0 %v2493_v5  ;;  %v372_v63 = vld [vmem:[%s2879_s29 + $0x230] sm:$0xff]  ;;  %v2726_v6 = vmov 0.0  }
  0xa0   : > { %1300 = vmatmul.mubr.f32.gmra.mrb[6].mxu0 %v335_v43  ;;  %2532 = vmatpush1.bf16.msra.mxu1 %v2989_v3  ;;  %v354_v3 = vld [vmem:[%s2879_s29 + $0x1a0] sm:$0xff]  ;;  %v376_v5 = vld [vmem:[%s2879_s29 + $0x250] sm:$0xff] }
  0xa1   : > { %2496 = vmatpush1.bf16.msra.mxu0 %v2495_v15  ;;  %983 = vmatprep.mubr.f32.mxu1 %v341_v16  ;;  %v404_v43 = vld [vmem:[%s2879_s29 + $0x330] sm:$0xff]  ;;  %v413_v15 = vld [vmem:[%s2879_s29 + $0x378] sm:$0xff]  ;;  %v422_v16 = vld [vmem:[%s2879_s29 + $0x3c0] sm:$0xff] }
  0xa2   : > { %1305 = vmatprep.mubr.f32.mxu0 %v345_v51  ;;  %2517 = vmatprep.subr.bf16.mxu1 %v2998_v12  ;;  %v353_v12 = vld [vmem:[%s2879_s29 + $0x198] sm:$0xff] }
  0xa3   : > { %984 = vmatmul.mubr.f32.gmra.mrb[8].mxu1 %v340_v25  ;;  %2498 = vmatprep.subr.bf16.mxu0 %v2497_v22  ;;  %v381_v51 = vld [vmem:[%s2879_s29 + $0x278] sm:$0xff]  ;;  %v390_v22 = vld [vmem:[%s2879_s29 + $0x2c0] sm:$0xff]  ;;  %v391_v25 = vld [vmem:[%s2879_s29 + $0x2c8] sm:$0xff] }
  0xa4   : > { %1306 = vmatmul.mubr.f32.gmra.mrb[8].mxu0 %v344_v59  ;;  %2533 = vmatpush1.bf16.msra.mxu1 %v3007_v21  ;;  %v363_v21 = vld [vmem:[%s2879_s29 + $0x1e8] sm:$0xff]  ;;  %v408_v59 = vld [vmem:[%s2879_s29 + $0x350] sm:$0xff] }
  0xa5   : > { %2500 = vmatpush1.bf16.msra.mxu0 %v2499_v29  ;;  %989 = vmatprep.mubr.f32.mxu1 %v350_v31  ;;  %v407_v29 = vld [vmem:[%s2879_s29 + $0x348] sm:$0xff]  ;;  %v409_v31 = vld [vmem:[%s2879_s29 + $0x358] sm:$0xff] }
  0xa6   : > { %1311 = vmatprep.mubr.f32.mxu0 %v354_v3  ;;  %2518 = vmatprep.subr.bf16.mxu1 %v3016_v30  ;;  %v362_v30 = vld [vmem:[%s2879_s29 + $0x1e0] sm:$0xff] }
  0xa7   : > { %990 = vmatmul.mubr.f32.gmra.mrb[10].mxu1 %v349_v40  ;;  %2502 = vmatprep.subr.bf16.mxu0 %v2501_v38  ;;  %v418_v3 = vld [vmem:[%s2879_s29 + $0x3a0] sm:$0xff]  ;;  %v425_v40 = vld [vmem:[%s2879_s29 + $0x3d8] sm:$0xff] }
  0xa8   : > { %1312 = vmatmul.mubr.f32.gmra.mrb[10].mxu0 %v353_v12  ;;  %2534 = vmatpush1.bf16.msra.mxu1 %v3025_v39  ;;  %v2509_v39 = vpack.c.bf16 %v733_v55, %v731_v53  ;;  %v426_v38 = vld [vmem:[%s2879_s29 + $0x3e0] sm:$0xff] }
  0xa9   : > { %2504 = vmatpush1.bf16.msra.mxu0 %v2503_v9  ;;  %995 = vmatprep.mubr.f32.mxu1 %v359_v45  ;;  %v434_v12 = vld [vmem:[%s2879_s29 + $0x420] sm:$0xff]  ;;  %v436_v9 = vld [vmem:[%s2879_s29 + $0x430] sm:$0xff] }
  0xaa   : > { %1317 = vmatprep.mubr.f32.mxu0 %v363_v21  ;;  %2519 = vmatprep.subr.bf16.mxu1 %v3034_v48  ;;  %v377_v48 = vld [vmem:[%s2879_s29 + $0x258] sm:$0xff]  ;;  %v444_v45 = vld [vmem:[%s2879_s29 + $0x470] sm:$0xff] }
  0xab   : > { %996 = vmatmul.mubr.f32.gmra.mrb[12].mxu1 %v358_v19  ;;  %2506 = vmatprep.subr.bf16.mxu0 %v2505_v52 }
  0xac   : > { %1318 = vmatmul.mubr.f32.gmra.mrb[12].mxu0 %v362_v30  ;;  %2535 = vmatpush1.bf16.msra.mxu1 %v3043_v57  ;;  %v310_v57 = vld [vmem:[%s2879_s29 + $0x40] sm:$0xff] }
  0xad   : > { %2508 = vmatpush1.bf16.msra.mxu0 %v2507_v56  ;;  %1001 = vmatprep.mubr.f32.mxu1 %v368_v58 }
  0xae   : > { %1323 = vmatprep.mubr.f32.mxu0 %v372_v63  ;;  %2520 = vmatprep.subr.bf16.mxu1 %v3052_v2  ;;  %v386_v2 = vld [vmem:[%s2879_s29 + $0x2a0] sm:$0xff] }
  0xaf   : > { %1002 = vmatmul.mubr.f32.gmra.mrb[14].mxu1 %v367_v1  ;;  %2510 = vmatprep.subr.bf16.mxu0 %v2509_v39 }
  0xb0   : > { %1324 = vmatmul.mubr.f32.gmra.mrb[14].mxu0 %v371_v4  ;;  %2536 = vmatpush1.bf16.msra.mxu1 %v3061_v13  ;;  %v319_v13 = vld [vmem:[%s2879_s29 + $0x88] sm:$0xff] }
  0xb1   : > { %2512 = vmatpush1.bf16.msra.mxu0 %v2511_v35  ;;  %1007 = vmatprep.mubr.f32.mxu1 %v377_v48 }
  0xb2   : > { %1442 = vmatprep.mubr.f32.mxu0 %v2726_v6  ;;  %2521 = vmatprep.subr.bf16.mxu1 %v3070_v23  ;;  %v394_v23 = vld [vmem:[%s2879_s29 + $0x2e0] sm:$0xff] }
  0xb3   : > { %1008 = vmatmul.mubr.f32.gmra.mrb[16].mxu1 %v376_v5 }
  0xb4   : > { %1443 = vmatmul.mubr.f32.vlgmr.msra.gmra.mrb[0].mxu0 %v310_v57  ;;  %2537 = vmatpush1.bf16.msra.mxu1 %v3079_v33  ;;  %v328_v33 = vld [vmem:[%s2879_s29 + $0xd0] sm:$0xff] }
  0xb5   : > { %1013 = vmatprep.mubr.f32.mxu1 %v386_v2  ;;  %1448 = vmatprep.mubr.f32.mxu0 %v2726_v6 }
  0xb6   : > { %2522 = vmatprep.subr.bf16.mxu1 %v3088_v44  ;;  %v403_v44 = vld [vmem:[%s2879_s29 + $0x328] sm:$0xff] }
  0xb7   : > { %1014 = vmatmul.mubr.f32.gmra.mrb[18].mxu1 %v385_v10 }
  0xb8   : > { %1449 = vmatmul.mubr.f32.gmra.mrb[2].mxu0 %v319_v13  ;;  %2538 = vmatpush1.bf16.msra.mxu1 %v3097_v54  ;;  %v337_v54 = vld [vmem:[%s2879_s29 + $0x118] sm:$0xff] }
  0xb9   : > { %1019 = vmatprep.mubr.f32.mxu1 %v395_v14  ;;  %1454 = vmatprep.mubr.f32.mxu0 %v2726_v6 }
  0xba   : > { %2523 = vmatprep.subr.bf16.mxu1 %v3106_v0  ;;  %v412_v0 = vld [vmem:[%s2879_s29 + $0x370] sm:$0xff] }
  0xbb   : > { %1020 = vmatmul.mubr.f32.gmra.mrb[20].mxu1 %v394_v23 }
  0xbc   : > { %1455 = vmatmul.mubr.f32.gmra.mrb[4].mxu0 %v328_v33  ;;  %2539 = vmatpush1.bf16.msra.mxu1 %v3115_v11  ;;  %v346_v11 = vld [vmem:[%s2879_s29 + $0x160] sm:$0xff] }
  0xbd   : > { %1025 = vmatprep.mubr.f32.mxu1 %v404_v43  ;;  %1460 = vmatprep.mubr.f32.mxu0 %v2726_v6 }
  0xbe   : > { %2524 = vmatprep.subr.bf16.mxu1 %v3124_v24  ;;  %v421_v24 = vld [vmem:[%s2879_s29 + $0x3b8] sm:$0xff] }
  0xbf   : > { %1026 = vmatmul.mubr.f32.gmra.mrb[22].mxu1 %v403_v44 }
  0xc0   : > { %1461 = vmatmul.mubr.f32.gmra.mrb[6].mxu0 %v337_v54  ;;  %2540 = vmatpush1.bf16.msra.mxu1 %v3133_v36  ;;  %v355_v36 = vld [vmem:[%s2879_s29 + $0x1a8] sm:$0xff]  ;;  %v1541_v54 = vlaneseq }
  0xc1   : > { %1031 = vmatprep.mubr.f32.mxu1 %v413_v15  ;;  %1466 = vmatprep.mubr.f32.mxu0 %v2726_v6 }
  0xc2   : > { %2525 = vmatprep.subr.bf16.mxu1 %v3142_v47  ;;  %v430_v47 = vld [vmem:[%s2879_s29 + $0x400] sm:$0xff] }
  0xc3   : > { %1032 = vmatmul.mubr.f32.gmra.mrb[24].mxu1 %v412_v0 }
  0xc4   : > { %1467 = vmatmul.mubr.f32.gmra.mrb[8].mxu0 %v346_v11  ;;  %2541 = vmatpush1.bf16.msra.mxu1 %v3151_v60  ;;  %v364_v60 = vld [vmem:[%s2879_s29 + $0x1f0] sm:$0xff]  ;;  %v1542_v11 = vshrl.u32 %v1541_v54, 7 }
  0xc5   : > { %1037 = vmatprep.mubr.f32.mxu1 %v422_v16  ;;  %1472 = vmatprep.mubr.f32.mxu0 %v2726_v6 }
  0xc6   : > { %2526 = vmatprep.subr.bf16.mxu1 %v3160_v7  ;;  %v439_v7 = vld [vmem:[%s2879_s29 + $0x448] sm:$0xff] }
  0xc7   : > { %1038 = vmatmul.mubr.f32.gmra.mrb[26].mxu1 %v421_v24 }
  0xc8   : > { %1473 = vmatmul.mubr.f32.gmra.mrb[10].mxu0 %v355_v36  ;;  %2542 = vmatpush1.bf16.msra.mxu1 %v3169_v20  ;;  %v373_v20 = vld [vmem:[%s2879_s29 + $0x238] sm:$0xff]  ;;  %v1543_v36 = vsub.s32 0, %v1542_v11 }
  0xc9   : > { %1043 = vmatprep.mubr.f32.mxu1 %v431_v17  ;;  %1478 = vmatprep.mubr.f32.mxu0 %v2726_v6 }
  0xca   : > { %2527 = vmatprep.subr.bf16.mxu1 %v3178_v34  ;;  %v380_v34 = vld [vmem:[%s2879_s29 + $0x270] sm:$0xff] }
  0xcb   : > { %1044 = vmatmul.mubr.f32.gmra.mrb[28].mxu1 %v430_v47  ;;  %v1539_v47 = vld [vmem:[%s3815_s2] sm:$0x3] }
  0xcc   : > { %1479 = vmatmul.mubr.f32.gmra.mrb[12].mxu0 %v364_v60  ;;  %2543 = vmatpush1.bf16.msra.mxu1 %v3187_v49  ;;  %v382_v49 = vld [vmem:[%s2879_s29 + $0x280] sm:$0xff]  ;;  %v1547_v60 = vsub.s32 1, %v1542_v11 }
  0xcd   : > { %1049 = vmatprep.mubr.f32.mxu1 %v440_v18  ;;  %1484 = vmatprep.mubr.f32.mxu0 %v2726_v6 }
  0xce   : > { %2528 = vmatprep.subr.bf16.mxu1 %v3196_v62  ;;  %v389_v62 = vld [vmem:[%s2879_s29 + $0x2b8] sm:$0xff] }
  0xcf   : > { %1050 = vmatmul.mubr.f32.gmra.mrb[30].mxu1 %v439_v7  ;;  %v3406_v7 = vrot.slane %v1539_v47, %v1543_v36 }
  0xd0   : > { %1485 = vmatmul.mubr.f32.gmra.mrb[14].mxu0 %v373_v20  ;;  %2544 = vmatpush1.bf16.msra.mxu1 %v3203_v8  ;;  %v399_v8 = vld [vmem:[%s2879_s29 + $0x308] sm:$0xff] }
  0xd1   : > { %1329 = vmatprep.mubr.f32.mxu1 %v381_v51  ;;  %1490 = vmatprep.mubr.f32.mxu0 %v2726_v6 }
  0xd3   : > { %1330 = vmatmul.mubr.f32.vlgmr.msra.gmra.mrb[32].mxu1 %v380_v34 }
  0xd4   : > { %1491 = vmatmul.mubr.f32.gmra.mrb[32].mxu0 %v382_v49  ;;  %1335 = vmatprep.mubr.f32.mxu1 %v390_v22  ;;  %v3410_v49 = vrot.slane %v1539_v47, %v1547_v60 }
  0xd5   : > { %1496 = vmatprep.mubr.f32.mxu0 %v2726_v6 }
  0xd7   : > { %1336 = vmatmul.mubr.f32.gmra.mrb[34].mxu1 %v389_v62 }
  0xd8   : > { %1497 = vmatmul.mubr.f32.gmra.mrb[34].mxu0 %v391_v25  ;;  %1341 = vmatprep.mubr.f32.mxu1 %v399_v8 }
  0xd9   : > { %1502 = vmatprep.mubr.f32.mxu0 %v2726_v6 }
  0xdb   : > { %1342 = vmatmul.mubr.f32.gmra.mrb[36].mxu1 %v398_v26 }
  0xdc   : > { %1503 = vmatmul.mubr.f32.gmra.mrb[36].mxu0 %v400_v28  ;;  %1347 = vmatprep.mubr.f32.mxu1 %v408_v59 }
  0xdd   : > { %1508 = vmatprep.mubr.f32.mxu0 %v2726_v6 }
  0xdf   : > { %1348 = vmatmul.mubr.f32.gmra.mrb[38].mxu1 %v407_v29 }
  0xe0   : > { %1509 = vmatmul.mubr.f32.gmra.mrb[38].mxu0 %v409_v31  ;;  %1353 = vmatprep.mubr.f32.mxu1 %v417_v32 }
  0xe1   : > { %1514 = vmatprep.mubr.f32.mxu0 %v2726_v6 }
  0xe3   : > { %1354 = vmatmul.mubr.f32.gmra.mrb[40].mxu1 %v416_v37 }
  0xe4   : > { %1515 = vmatmul.mubr.f32.gmra.mrb[40].mxu0 %v418_v3  ;;  %1359 = vmatprep.mubr.f32.mxu1 %v426_v38 }
  0xe5   : > { %1520 = vmatprep.mubr.f32.mxu0 %v2726_v6 }
  0xe7   : > { %1360 = vmatmul.mubr.f32.gmra.mrb[42].mxu1 %v425_v40 }
  0xe8   : > { %1521 = vmatmul.mubr.f32.gmra.mrb[42].mxu0 %v427_v41  ;;  %1365 = vmatprep.mubr.f32.mxu1 %v435_v42 }
  0xe9   : > { %1526 = vmatprep.mubr.f32.mxu0 %v2726_v6 }
  0xeb   : > { %1366 = vmatmul.mubr.f32.gmra.mrb[44].mxu1 %v434_v12 }
  0xec   : > { %1527 = vmatmul.mubr.f32.gmra.mrb[44].mxu0 %v436_v9  ;;  %1371 = vmatprep.mubr.f32.mxu1 %v444_v45 }
  0xed   : > { %1532 = vmatprep.mubr.f32.mxu0 %v2726_v6 }
  0xef   : > { %1372 = vmatmul.mubr.f32.gmra.mrb[46].mxu1 %v443_v46 }
  0xf0   : > { %1533 = vmatmul.mubr.f32.gmra.mrb[46].mxu0 %v445_v50 }
 0x147   : > { %v1170_v21 = vpop.f32.mrb[16].mxu0 }
 0x148   : > { %v1172_v52 = vpop.f32.mrb[17].mxu0 }
 0x14b   : > { %v1176_v19 = vpop.f32.mrb[18].mxu0 }
 0x14c   : > { %v1178_v53 = vpop.f32.mrb[19].mxu0 }
 0x14f   : > { %v1182_v55 = vpop.f32.mrb[20].mxu0 }
 0x150   : > { %v3365_v30 = vpop.f32.mrb[21].mxu0 }
 0x153   : > { %v3367_v56 = vpop.f32.mrb[22].mxu0 }
 0x154   : > { %v3369_v58 = vpop.f32.mrb[23].mxu0 }
 0x157   : > { %v3371_v27 = vpop.f32.mrb[24].mxu0 }
 0x158   : > { %v3373_v61 = vpop.f32.mrb[25].mxu0 }
 0x15b   : > { %v3375_v63 = vpop.f32.mrb[26].mxu0 }
 0x15c   : > { %v3377_v39 = vpop.f32.mrb[27].mxu0 }
 0x15f   : > { %v3379_v1 = vpop.f32.mrb[28].mxu0 }
 0x160   : > { %v3381_v4 = vpop.f32.mrb[29].mxu0 }
 0x163   : > { %v3383_v35 = vpop.f32.mrb[30].mxu0 }
 0x164   : > { %v3385_v48 = vpop.f32.mrb[31].mxu0 }
 0x166   : > { %v961_v5 = vpop.f32.mrb[0].mxu1 }
 0x167   : > { %v963_v57 = vpop.f32.mrb[1].mxu1 }
 0x16a   : > { %v967_v6 = vpop.f32.mrb[2].mxu1 }
 0x16b   : > { %v969_v2 = vpop.f32.mrb[3].mxu1 }
 0x16e   : > { %v973_v10 = vpop.f32.mrb[4].mxu1 }
 0x16f   : > { %v975_v13 = vpop.f32.mrb[5].mxu1 }
 0x172   : > { %v979_v14 = vpop.f32.mrb[6].mxu1 }
 0x173   : > { %v981_v23 = vpop.f32.mrb[7].mxu1 }
 0x176   : > { %v3387_v33 = vpop.f32.mrb[8].mxu1 }
 0x177   : > { %v3389_v43 = vpop.f32.mrb[9].mxu1 }
 0x17a   : > { %v3391_v44 = vpop.f32.mrb[10].mxu1 }
 0x17b   : > { %v3393_v15 = vpop.f32.mrb[11].mxu1 }
 0x17e   : > { %v3395_v0 = vpop.f32.mrb[12].mxu1 }
 0x17f   : > { %v3397_v16 = vpop.f32.mrb[13].mxu1 }
 0x182   : > { %v3399_v24 = vpop.f32.mrb[14].mxu1 }
 0x183   : > { %v3401_v17 = vpop.f32.mrb[15].mxu1 }
 0x186   : > { %v1009_v18 = vpop.f32.mrb[16].mxu1 }
 0x187   : > { %v3408_v20 = vadd.f32 %v1170_v21, %v1009_v18  ;;  %v1444_v51 = vpop.f32.mrb[0].mxu0  ;;  %v1011_v34 = vpop.f32.mrb[17].mxu1 }
 0x188   : > { %v3412_v22 = vadd.f32 %v1444_v51, %v961_v5  ;;  %v3414_v62 = vadd.f32 %v1172_v52, %v1011_v34  ;;  %v1446_v25 = vpop.f32.mrb[1].mxu0 }
 0x189   : > { %v3416_v8 = vadd.f32 %v1446_v25, %v963_v57 }
 0x18a   : > { %v1015_v26 = vpop.f32.mrb[18].mxu1  ;;  %v1551_v28 = vmul.f32 %v3412_v22, %v3406_v7 }
 0x18b   : > { %v3420_v59 = vadd.f32 %v1176_v19, %v1015_v26  ;;  %v1450_v29 = vpop.f32.mrb[2].mxu0  ;;  %v1017_v31 = vpop.f32.mrb[19].mxu1  ;;  %v1552_v32 = vmul.f32 %v3416_v8, %v3410_v49 }
 0x18c   : > { %v3424_v37 = vadd.f32 %v1450_v29, %v967_v6  ;;  %v3426_v3 = vadd.f32 %v1178_v53, %v1017_v31  ;;  %v1452_v38 = vpop.f32.mrb[3].mxu0  ;;  %v1631_v42 = vmul.f32 %v3412_v22, %v1551_v28 }
 0x18d   : > { %v3428_v40 = vadd.f32 %v1452_v38, %v969_v2  ;;  %v1583_v41 = vadd.f32 %v1552_v32, %v1551_v28  ;;  %v1632_v12 = vmul.f32 %v3416_v8, %v1552_v32 }
 0x18e   : > { %v1021_v9 = vpop.f32.mrb[20].mxu1  ;;  %v1553_v45 = vmul.f32 %v3424_v37, %v3406_v7 }
 0x18f   : > { %v1456_v46 = vpop.f32.mrb[4].mxu0  ;;  %1584 = vadd.xlane.f32.xlu0 %v1583_v41  ;;  %v3434_v50 = vadd.f32 %v1182_v55, %v1021_v9  ;;  %v1023_v21 = vpop.f32.mrb[21].mxu1  ;;  %v1554_v52 = vmul.f32 %v3428_v40, %v3410_v49  ;;  %v1663_v2 = vadd.f32 %v1632_v12, %v1631_v42 }
 0x190   : > { %v3438_v19 = vadd.f32 %v1456_v46, %v973_v10  ;;  %v3441_v53 = vadd.f32 %v3365_v30, %v1023_v21  ;;  %v1458_v5 = vpop.f32.mrb[5].mxu0  ;;  %v1633_v57 = vmul.f32 %v3424_v37, %v1553_v45 }
 0x191   : > { %v3444_v6 = vadd.f32 %v1458_v5, %v975_v13  ;;  %v1634_v54 = vmul.f32 %v3428_v40, %v1554_v52  ;;  %v1586_v25 = vadd.f32 %v1554_v52, %v1553_v45 }
 0x192   : > { %v1027_v11 = vpop.f32.mrb[22].mxu1  ;;  %v1555_v55 = vmul.f32 %v3438_v19, %v3406_v7 }
 0x193   : > { %v1462_v36 = vpop.f32.mrb[6].mxu0  ;;  %1664 = vadd.xlane.f32.xlu0 %v1663_v2  ;;  %v3450_v10 = vadd.f32 %v3367_v56, %v1027_v11  ;;  %v1029_v47 = vpop.f32.mrb[23].mxu1  ;;  %v1666_v30 = vadd.f32 %v1634_v54, %v1633_v57  ;;  %v1556_v60 = vmul.f32 %v3444_v6, %v3410_v49 }
 0x194   : > { %v3454_v18 = vadd.f32 %v1462_v36, %v979_v14  ;;  %v3457_v13 = vadd.f32 %v3369_v58, %v1029_v47  ;;  %v1464_v51 = vpop.f32.mrb[7].mxu0  ;;  %v1635_v26 = vmul.f32 %v3438_v19, %v1555_v55 }
 0x195   : > { %v3459_v34 = vadd.f32 %v1464_v51, %v981_v23  ;;  %1667 = vadd.xlane.f32.xlu1 %v1666_v30  ;;  %v1636_v56 = vmul.f32 %v3444_v6, %v1556_v60  ;;  %v1589_v32 = vadd.f32 %v1556_v60, %v1555_v55 }
 0x196   : > { %v1033_v28 = vpop.f32.mrb[24].mxu1  ;;  %v1557_v29 = vmul.f32 %v3454_v18, %v3406_v7 }
 0x197   : > { %v1468_v31 = vpop.f32.mrb[8].mxu0  ;;  %1587 = vadd.xlane.f32.xlu0 %v1586_v25  ;;  %v3466_v14 = vadd.f32 %v3371_v27, %v1033_v28  ;;  %v1035_v58 = vpop.f32.mrb[25].mxu1  ;;  %v1558_v23 = vmul.f32 %v3459_v34, %v3410_v49  ;;  %v1669_v9 = vadd.f32 %v1636_v56, %v1635_v26 }
 0x198   : > { %v3471_v38 = vadd.f32 %v1468_v31, %v3387_v33  ;;  %v3474_v41 = vadd.f32 %v3373_v61, %v1035_v58  ;;  %v1470_v42 = vpop.f32.mrb[9].mxu0  ;;  %v1637_v46 = vmul.f32 %v3454_v18, %v1557_v29 }
 0x199   : > { %v3477_v12 = vadd.f32 %v1470_v42, %v3389_v43  ;;  %1590 = vadd.xlane.f32.xlu1 %v1589_v32  ;;  %v1592_v61 = vadd.f32 %v1558_v23, %v1557_v29  ;;  %v1638_v43 = vmul.f32 %v3459_v34, %v1558_v23 }
 0x19a   : > { %v1039_v45 = vpop.f32.mrb[26].mxu1  ;;  %v1559_v27 = vmul.f32 %v3471_v38, %v3406_v7 }
 0x19b   : > { %v1474_v21 = vpop.f32.mrb[10].mxu0  ;;  %1670 = vadd.xlane.f32.xlu0 %v1669_v9  ;;  %v3483_v33 = vadd.f32 %v3375_v63, %v1039_v45  ;;  %v1041_v52 = vpop.f32.mrb[27].mxu1  ;;  %v1560_v5 = vmul.f32 %v3477_v12, %v3410_v49  ;;  %v1672_v51 = vadd.f32 %v1638_v43, %v1637_v46 }
 0x19c   : > { %v3489_v57 = vadd.f32 %v1474_v21, %v3391_v44  ;;  %v3492_v2 = vadd.f32 %v3377_v39, %v1041_v52  ;;  %v1476_v54 = vpop.f32.mrb[11].mxu0  ;;  %v1639_v55 = vmul.f32 %v3471_v38, %v1559_v27 }
 0x19d   : > { %v3495_v11 = vadd.f32 %v1476_v54, %v3393_v15  ;;  %1593 = vadd.xlane.f32.xlu1 %v1592_v61  ;;  %v1595_v63 = vadd.f32 %v1560_v5, %v1559_v27  ;;  %v1640_v36 = vmul.f32 %v3477_v12, %v1560_v5 }
 0x19e   : > { %v1045_v47 = vpop.f32.mrb[28].mxu1  ;;  %v1561_v30 = vmul.f32 %v3489_v57, %v3406_v7 }
 0x19f   : > { %v1480_v60 = vpop.f32.mrb[12].mxu0  ;;  %1596 = vadd.xlane.f32.xlu0 %v1595_v63  ;;  %v3502_v44 = vadd.f32 %v3379_v1, %v1045_v47  ;;  %v1047_v39 = vpop.f32.mrb[29].mxu1  ;;  %v1562_v15 = vmul.f32 %v3495_v11, %v3410_v49  ;;  %v1675_v29 = vadd.f32 %v1640_v36, %v1639_v55 }
 0x1a0   : > { %v3507_v25 = vadd.f32 %v1480_v60, %v3395_v0  ;;  %v3510_v26 = vadd.f32 %v3381_v4, %v1047_v39  ;;  %v1482_v56 = vpop.f32.mrb[13].mxu0  ;;  %v1641_v58 = vmul.f32 %v3489_v57, %v1561_v30 }
 0x1a1   : > { %v3513_v28 = vadd.f32 %v1482_v56, %v3397_v16  ;;  %1673 = vadd.xlane.f32.xlu1 %v1672_v51  ;;  %v1598_v4 = vadd.f32 %v1562_v15, %v1561_v30  ;;  %v1642_v16 = vmul.f32 %v3495_v11, %v1562_v15 }
 0x1a2   : > { %v1051_v31 = vpop.f32.mrb[30].mxu1  ;;  %v1563_v1 = vmul.f32 %v3507_v25, %v3406_v7 }
 0x1a3   : > { %v1486_v32 = vpop.f32.mrb[14].mxu0  ;;  %1676 = vadd.xlane.f32.xlu0 %v1675_v29  ;;  %v3519_v0 = vadd.f32 %v3383_v35, %v1051_v31  ;;  %v1053_v23 = vpop.f32.mrb[31].mxu1  ;;  %v1564_v42 = vmul.f32 %v3513_v28, %v3410_v49  ;;  %v1678_v54 = vadd.f32 %v1642_v16, %v1641_v58 }
 0x1a4   : > { %v3525_v9 = vadd.f32 %v1486_v32, %v3399_v24  ;;  %v3528_v45 = vadd.f32 %v3385_v48, %v1053_v23  ;;  %v1488_v27 = vpop.f32.mrb[15].mxu0  ;;  %v1643_v21 = vmul.f32 %v3507_v25, %v1563_v1 }
 0x1a5   : > { %v3531_v46 = vadd.f32 %v1488_v27, %v3401_v17  ;;  %1599 = vadd.xlane.f32.xlu1 %v1598_v4  ;;  %v1601_v35 = vadd.f32 %v1564_v42, %v1563_v1  ;;  %v1644_v52 = vmul.f32 %v3513_v28, %v1564_v42 }
 0x1a6   : > { %v1331_v61 = vpop.f32.mrb[32].mxu1  ;;  %v1565_v5 = vmul.f32 %v3525_v9, %v3406_v7 }
 0x1a7   : > { %1602 = vadd.xlane.f32.xlu0 %v1601_v35  ;;  %v2562_v24 = vadd.f32 %v3408_v20, %v1331_v61  ;;  %v1333_v43 = vpop.f32.mrb[33].mxu1  ;;  %v1492_v48 = vpop.f32.mrb[32].mxu0  ;;  %v1566_v17 = vmul.f32 %v3531_v46, %v3410_v49  ;;  %v1681_v47 = vadd.f32 %v1644_v52, %v1643_v21 }
 0x1a8   : > { %v2565_v63 = vadd.f32 %v3414_v62, %v1333_v43  ;;  %v1494_v55 = vpop.f32.mrb[33].mxu0  ;;  %v1645_v39 = vmul.f32 %v3525_v9, %v1565_v5 }
 0x1a9   : > { %v3541_v36 = vadd.f32 %v2562_v24, %v1492_v48  ;;  %1679 = vadd.xlane.f32.xlu1 %v1678_v54  ;;  %v1604_v56 = vadd.f32 %v1566_v17, %v1565_v5  ;;  %v1646_v29 = vmul.f32 %v3531_v46, %v1566_v17  ;;  %v2727_v48 = vmov 0  }
 0x1aa   : > { %v3543_v30 = vadd.f32 %v2565_v63, %v1494_v55  ;;  %v1337_v60 = vpop.f32.mrb[34].mxu1  ;;  %2684 = vset.pattern.permute.xlu0 %v2727_v48  ;;  %2685 = vset.pattern.permute.xlu1 %v2727_v48 }
 0x1ab   : > { %1682 = vadd.xlane.f32.xlu0 %v1681_v47  ;;  %v2568_v20 = vadd.f32 %v3420_v59, %v1337_v60  ;;  %v1339_v51 = vpop.f32.mrb[35].mxu1  ;;  %v1498_v15 = vpop.f32.mrb[34].mxu0  ;;  %v1567_v62 = vmul.f32 %v3541_v36, %v3406_v7 }
 0x1ac   : > { %v2571_v31 = vadd.f32 %v3426_v3, %v1339_v51  ;;  %v1500_v1 = vpop.f32.mrb[35].mxu0  ;;  %v1568_v58 = vmul.f32 %v3543_v30, %v3410_v49  ;;  %v1684_v3 = vadd.f32 %v1646_v29, %v1645_v39 }
 0x1ad   : > { %v3553_v32 = vadd.f32 %v2568_v20, %v1498_v15  ;;  %1605 = vadd.xlane.f32.xlu1 %v1604_v56  ;;  %v1647_v42 = vmul.f32 %v3541_v36, %v1567_v62 }
 0x1ae   : > { %v3555_v23 = vadd.f32 %v2571_v31, %v1500_v1  ;;  %v1343_v59 = vpop.f32.mrb[36].mxu1  ;;  %v1607_v4 = vadd.f32 %v1568_v58, %v1567_v62  ;;  %v1648_v16 = vmul.f32 %v3543_v30, %v1568_v58 }
 0x1af   : > { %v2574_v27 = vadd.f32 %v3434_v50, %v1343_v59  ;;  %v1345_v35 = vpop.f32.mrb[37].mxu1  ;;  %v1504_v21 = vpop.f32.mrb[36].mxu0  ;;  %v1569_v52 = vmul.f32 %v3553_v32, %v3406_v7 }
 0x1b0   : > { %v2577_v61 = vadd.f32 %v3441_v53, %v1345_v35  ;;  %1608 = vadd.xlane.f32.xlu0 %v1607_v4  ;;  %v1506_v5 = vpop.f32.mrb[37].mxu0  ;;  %v1570_v24 = vmul.f32 %v3555_v23, %v3410_v49  ;;  %v1687_v17 = vadd.f32 %v1648_v16, %v1647_v42 }
 0x1b1   : > { %v3565_v43 = vadd.f32 %v2574_v27, %v1504_v21  ;;  %1685 = vadd.xlane.f32.xlu1 %v1684_v3  ;;  %v1649_v60 = vmul.f32 %v3553_v32, %v1569_v52 }
 0x1b2   : > { %v3567_v54 = vadd.f32 %v2577_v61, %v1506_v5  ;;  %v1349_v50 = vpop.f32.mrb[38].mxu1  ;;  %v1610_v63 = vadd.f32 %v1570_v24, %v1569_v52  ;;  %v1650_v39 = vmul.f32 %v3555_v23, %v1570_v24 }
 0x1b3   : > { %v2580_v55 = vadd.f32 %v3450_v10, %v1349_v50  ;;  %v1351_v47 = vpop.f32.mrb[39].mxu1  ;;  %v1510_v53 = vpop.f32.mrb[38].mxu0  ;;  %v1571_v20 = vmul.f32 %v3565_v43, %v3406_v7 }
 0x1b4   : > { %v2583_v51 = vadd.f32 %v3457_v13, %v1351_v47  ;;  %1688 = vadd.xlane.f32.xlu0 %v1687_v17  ;;  %v1512_v15 = vpop.f32.mrb[39].mxu0  ;;  %v1572_v56 = vmul.f32 %v3567_v54, %v3410_v49  ;;  %v1690_v42 = vadd.f32 %v1650_v39, %v1649_v60 }
 0x1b5   : > { %v3577_v29 = vadd.f32 %v2580_v55, %v1510_v53  ;;  %1611 = vadd.xlane.f32.xlu1 %v1610_v63  ;;  %v1651_v1 = vmul.f32 %v3565_v43, %v1571_v20 }
 0x1b6   : > { %v3579_v10 = vadd.f32 %v2583_v51, %v1512_v15  ;;  %v1355_v62 = vpop.f32.mrb[40].mxu1  ;;  %v1613_v31 = vadd.f32 %v1572_v56, %v1571_v20  ;;  %v1652_v58 = vmul.f32 %v3567_v54, %v1572_v56 }
 0x1b7   : > { %v2586_v59 = vadd.f32 %v3466_v14, %v1355_v62  ;;  %v1357_v4 = vpop.f32.mrb[41].mxu1  ;;  %v1516_v13 = vpop.f32.mrb[40].mxu0  ;;  %v1573_v16 = vmul.f32 %v3577_v29, %v3406_v7 }
 0x1b8   : > { %v2589_v27 = vadd.f32 %v3474_v41, %v1357_v4  ;;  %1614 = vadd.xlane.f32.xlu0 %v1613_v31  ;;  %v1518_v35 = vpop.f32.mrb[41].mxu0  ;;  %v1574_v21 = vmul.f32 %v3579_v10, %v3410_v49  ;;  %v1693_v14 = vadd.f32 %v1652_v58, %v1651_v1 }
 0x1b9   : > { %v3589_v3 = vadd.f32 %v2586_v59, %v1516_v13  ;;  %1691 = vadd.xlane.f32.xlu1 %v1690_v42  ;;  %v1653_v17 = vmul.f32 %v3577_v29, %v1573_v16 }
 0x1ba   : > { %v3591_v52 = vadd.f32 %v2589_v27, %v1518_v35  ;;  %v1361_v61 = vpop.f32.mrb[42].mxu1  ;;  %v1616_v5 = vadd.f32 %v1574_v21, %v1573_v16  ;;  %v1654_v41 = vmul.f32 %v3579_v10, %v1574_v21 }
 0x1bb   : > { %v2592_v24 = vadd.f32 %v3483_v33, %v1361_v61  ;;  %v1363_v48 = vpop.f32.mrb[43].mxu1  ;;  %v1522_v50 = vpop.f32.mrb[42].mxu0  ;;  %v1575_v63 = vmul.f32 %v3589_v3, %v3406_v7 }
 0x1bc   : > { %v2595_v55 = vadd.f32 %v3492_v2, %v1363_v48  ;;  %1694 = vadd.xlane.f32.xlu0 %v1693_v14  ;;  %v1524_v47 = vpop.f32.mrb[43].mxu0  ;;  %v1576_v53 = vmul.f32 %v3591_v52, %v3410_v49  ;;  %v1696_v31 = vadd.f32 %v1654_v41, %v1653_v17 }
 0x1bd   : > { %v3601_v60 = vadd.f32 %v2592_v24, %v1522_v50  ;;  %1617 = vadd.xlane.f32.xlu1 %v1616_v5  ;;  %v1655_v51 = vmul.f32 %v3589_v3, %v1575_v63 }
 0x1be   : > { %v3603_v33 = vadd.f32 %v2595_v55, %v1524_v47  ;;  %v1367_v39 = vpop.f32.mrb[44].mxu1  ;;  %v1619_v20 = vadd.f32 %v1576_v53, %v1575_v63  ;;  %v1656_v15 = vmul.f32 %v3591_v52, %v1576_v53 }
 0x1bf   : > { %v2598_v56 = vadd.f32 %v3502_v44, %v1367_v39  ;;  %v1369_v62 = vpop.f32.mrb[45].mxu1  ;;  %v1528_v2 = vpop.f32.mrb[44].mxu0  ;;  %v1577_v1 = vmul.f32 %v3601_v60, %v3406_v7 }
 0x1c0   : > { %v2601_v58 = vadd.f32 %v3510_v26, %v1369_v62  ;;  %1620 = vadd.xlane.f32.xlu0 %v1619_v20  ;;  %v1530_v59 = vpop.f32.mrb[45].mxu0  ;;  %v1578_v4 = vmul.f32 %v3603_v33, %v3410_v49  ;;  %v1699_v44 = vadd.f32 %v1656_v15, %v1655_v51 }
 0x1c1   : > { %v3613_v13 = vadd.f32 %v2598_v56, %v1528_v2  ;;  %1697 = vadd.xlane.f32.xlu1 %v1696_v31  ;;  %v1657_v14 = vmul.f32 %v3601_v60, %v1577_v1 }
 0x1c2   : > { %v3615_v42 = vadd.f32 %v2601_v58, %v1530_v59  ;;  %v1373_v16 = vpop.f32.mrb[46].mxu1  ;;  %v1622_v27 = vadd.f32 %v1578_v4, %v1577_v1  ;;  %v1658_v26 = vmul.f32 %v3603_v33, %v1578_v4 }
 0x1c3   : > { %v2604_v35 = vadd.f32 %v3519_v0, %v1373_v16  ;;  %v1375_v21 = vpop.f32.mrb[47].mxu1  ;;  %v1534_v61 = vpop.f32.mrb[46].mxu0  ;;  %v1579_v5 = vmul.f32 %v3613_v13, %v3406_v7 }
 0x1c4   : > { %v2607_v24 = vadd.f32 %v3528_v45, %v1375_v21  ;;  %1700 = vadd.xlane.f32.xlu0 %v1699_v44  ;;  %v1536_v48 = vpop.f32.mrb[47].mxu0  ;;  %v1580_v50 = vmul.f32 %v3615_v42, %v3410_v49  ;;  %v1702_v47 = vadd.f32 %v1658_v26, %v1657_v14 }
 0x1c5   : > { %v3625_v17 = vadd.f32 %v2604_v35, %v1534_v61  ;;  %1623 = vadd.xlane.f32.xlu1 %v1622_v27  ;;  %v1659_v63 = vmul.f32 %v3613_v13, %v1579_v5 }
 0x1c6   : > { %v3627_v0 = vadd.f32 %v2607_v24, %v1536_v48  ;;  %v1625_v41 = vadd.f32 %v1580_v50, %v1579_v5  ;;  %v1660_v55 = vmul.f32 %v3615_v42, %v1580_v50  ;;  %v1775_v24 = vld [vmem:[%s3645_s10] sm:$0xff] }
 0x1c7   : > { %v1581_v53 = vmul.f32 %v3625_v17, %v3406_v7 }
 0x1c8   : > { %1626 = vadd.xlane.f32.xlu0 %v1625_v41  ;;  %v1582_v45 = vmul.f32 %v3627_v0, %v3410_v49  ;;  %v1705_v39 = vadd.f32 %v1660_v55, %v1659_v63 }
 0x1c9   : > { %1703 = vadd.xlane.f32.xlu1 %v1702_v47  ;;  %v1661_v51 = vmul.f32 %v3625_v17, %v1581_v53 }
 0x1ca   : > { %v1628_v20 = vadd.f32 %v1582_v45, %v1581_v53  ;;  %v1662_v15 = vmul.f32 %v3627_v0, %v1582_v45  ;;  %v1776_v45 = vld [vmem:[%s3645_s10 + $0x8] sm:$0xff] }
 0x1cc   : > { %1706 = vadd.xlane.f32.xlu0 %v1705_v39  ;;  %v1708_v56 = vadd.f32 %v1662_v15, %v1661_v51 }
 0x1cd   : > { %1629 = vadd.xlane.f32.xlu1 %v1628_v20 }
 0x1d1   : > { %1709 = vadd.xlane.f32.xlu1 %v1708_v56 }
 0x21c   : > { %v1585_v62 = vpop.xlane.xlu0 %1584 }
 0x21d   : > { %v1711_v2 = vmul.f32 %v1585_v62, %v1585_v62 }
 0x220   : > { %v1665_v31 = vpop.xlane.xlu0 %1664 }
 0x221   : > { %v1727_v7 = vsub.f32 %v1665_v31, %v1711_v2 }
 0x222   : > { %v1668_v1 = vpop.xlane.xlu1 %1667 }
 0x223   : > { %v1743_v58 = vadd.f32 1e-05, %v1727_v7 }
 0x224   : > { %v1588_v59 = vpop.xlane.xlu0 %1587 }
 0x225   : > { %2686 = vrsqrt.f32 %v1743_v58  ;;  %v1712_v49 = vmul.f32 %v1588_v59, %v1588_v59 }
 0x226   : > { %v3637_v4 = vpop.xlane.xlu1 %1590 }
 0x227   : > { %v1728_v16 = vsub.f32 %v1668_v1, %v1712_v49  ;;  %v1713_v44 = vmul.f32 %v3637_v4, %v3637_v4  ;;  %v1808_v1 = vld [vmem:[%s3658_s13 + $0x8] sm:$0xff]  ;;  %v1807_v49 = vld [vmem:[%s3658_s13] sm:$0xff] }
 0x228   : > { %v1671_v27 = vpop.xlane.xlu0 %1670 }
 0x229   : > { %v1744_v35 = vadd.f32 1e-05, %v1728_v16  ;;  %v1729_v21 = vsub.f32 %v1671_v27, %v1713_v44 }
 0x22a   : > { %v1594_v61 = vpop.xlane.xlu1 %1593 }
 0x22b   : > { %2688 = vrsqrt.f32 %v1744_v35  ;;  %v1745_v26 = vadd.f32 1e-05, %v1729_v21  ;;  %v1714_v5 = vmul.f32 %v1594_v61, %v1594_v61 }
 0x22c   : > { %v3647_v14 = vpop.xlane.xlu0 %1596 }
 0x22d   : > { %2690 = vrsqrt.f32 %v1745_v26  ;;  %v1715_v39 = vmul.f32 %v3647_v14, %v3647_v14 }
 0x22e   : > { %v1674_v48 = vpop.xlane.xlu1 %1673 }
 0x22f   : > { %v2687_v50 = vpop.eup %2686  ;;  %v1730_v41 = vsub.f32 %v1674_v48, %v1714_v5  ;;  %v1777_v48 = vld [vmem:[%s3645_s10 + $0x10] sm:$0xff] }
 0x230   : > { %v1677_v63 = vpop.xlane.xlu0 %1676  ;;  %v1791_v55 = vmul.f32 %v2687_v50, %v1775_v24  ;;  %v1778_v50 = vld [vmem:[%s3645_s10 + $0x18] sm:$0xff] }
 0x231   : > { %v1746_v47 = vadd.f32 1e-05, %v1730_v41  ;;  %v1731_v15 = vsub.f32 %v1677_v63, %v1715_v39 }
 0x232   : > { %v3650_v53 = vpop.xlane.xlu1 %1599  ;;  %1857 = vperm.xlu0 %2684, %v1791_v55   ;;  %v1823_v7 = vmul.f32 %v1791_v55, %v1585_v62 }
 0x233   : > { %2692 = vrsqrt.f32 %v1746_v47  ;;  %v1716_v56 = vmul.f32 %v3650_v53, %v3650_v53  ;;  %v1747_v44 = vadd.f32 1e-05, %v1731_v15 }
 0x234   : > { %v3660_v20 = vpop.xlane.xlu0 %1602  ;;  %v1839_v5 = vsub.f32 %v1807_v49, %v1823_v7  ;;  %v1809_v49 = vld [vmem:[%s3658_s13 + $0x10] sm:$0xff] }
 0x235   : > { %v2689_v51 = vpop.eup %2688 }
 0x236   : > { %v1792_v2 = vmul.f32 %v2689_v51, %v1776_v45  ;;  %v1680_v31 = vpop.xlane.xlu1 %1679  ;;  %v1717_v45 = vmul.f32 %v3660_v20, %v3660_v20  ;;  %v1810_v51 = vld [vmem:[%s3658_s13 + $0x18] sm:$0xff] }
 0x237   : > { %v1732_v58 = vsub.f32 %v1680_v31, %v1716_v56  ;;  %v2691_v24 = vpop.eup %2690 }
 0x238   : > { %v1824_v16 = vmul.f32 %v1792_v2, %v1588_v59  ;;  %1862 = vperm.xlu1 %2685, %v1792_v2   ;;  %v1683_v35 = vpop.xlane.xlu0 %1682  ;;  %v1793_v55 = vmul.f32 %v2691_v24, %v1777_v48 }
 0x239   : > { %v1748_v27 = vadd.f32 1e-05, %v1732_v58  ;;  %v1733_v56 = vsub.f32 %v1683_v35, %v1717_v45 }
 0x23a   : > { %v1840_v21 = vsub.f32 %v1808_v1, %v1824_v16  ;;  %v3666_v26 = vpop.xlane.xlu1 %1605  ;;  %v1825_v58 = vmul.f32 %v1793_v55, %v3637_v4  ;;  %v1780_v16 = vld [vmem:[%s3645_s10 + $0x28] sm:$0xff] }
 0x23b   : > { %2694 = vrsqrt.f32 %v1748_v27  ;;  %v1718_v59 = vmul.f32 %v3666_v26, %v3666_v26  ;;  %v1749_v27 = vadd.f32 1e-05, %v1733_v56  ;;  %v1782_v56 = vld [vmem:[%s3645_s10 + $0x38] sm:$0xff] }
 0x23c   : > { %1974 = vperm.xlu0 %2684, %v1840_v21   ;;  %1969 = vperm.xlu1 %2685, %v1839_v5   ;;  %2696 = vrsqrt.f32 %v1747_v44  ;;  %v1841_v5 = vsub.f32 %v1809_v49, %v1825_v58 }
 0x23d   : > { %v2693_v62 = vpop.eup %2692  ;;  %v3672_v41 = vpop.xlane.xlu0 %1608 }
 0x23e   : > { %v1686_v63 = vpop.xlane.xlu1 %1685  ;;  %v1794_v47 = vmul.f32 %v2693_v62, %v1778_v50  ;;  %v1719_v4 = vmul.f32 %v3672_v41, %v3672_v41  ;;  %v1812_v62 = vld [vmem:[%s3658_s13 + $0x28] sm:$0xff] }
 0x23f   : > { %v1734_v39 = vsub.f32 %v1686_v63, %v1718_v59  ;;  %v1779_v59 = vld [vmem:[%s3645_s10 + $0x20] sm:$0xff] }
 0x240   : > { %1867 = vperm.xlu1 %2685, %v1793_v55   ;;  %v1826_v15 = vmul.f32 %v1794_v47, %v1594_v61 }
 0x241   : > { %v1750_v2 = vadd.f32 1e-05, %v1734_v39  ;;  %v1689_v31 = vpop.xlane.xlu0 %1688 }
 0x242   : > { %v3677_v7 = vpop.xlane.xlu1 %1611  ;;  %v1842_v1 = vsub.f32 %v1810_v51, %v1826_v15  ;;  %v1735_v55 = vsub.f32 %v1689_v31, %v1719_v4 }
 0x243   : > { %2698 = vrsqrt.f32 %v1750_v2  ;;  %v1720_v61 = vmul.f32 %v3677_v7, %v3677_v7 }
 0x244   : > { %1984 = vperm.xlu0 %2684, %v1842_v1   ;;  %1872 = vperm.xlu1 %2685, %v1794_v47   ;;  %2700 = vrsqrt.f32 %v1749_v27  ;;  %v1751_v1 = vadd.f32 1e-05, %v1735_v55  ;;  %v1784_v55 = vld [vmem:[%s3645_s10 + $0x48] sm:$0xff] }
 0x245   : > { %v2695_v44 = vpop.eup %2694  ;;  %v3684_v35 = vpop.xlane.xlu0 %1614 }
 0x246   : > { %v1692_v21 = vpop.xlane.xlu1 %1691  ;;  %v1796_v24 = vmul.f32 %v2695_v44, %v1780_v16  ;;  %v2697_v48 = vpop.eup %2696  ;;  %v1721_v44 = vmul.f32 %v3684_v35, %v3684_v35 }
 0x247   : > { %v1736_v50 = vsub.f32 %v1692_v21, %v1720_v61  ;;  %v1795_v15 = vmul.f32 %v2697_v48, %v1779_v59  ;;  %v1814_v61 = vld [vmem:[%s3658_s13 + $0x38] sm:$0xff]  ;;  %v1811_v21 = vld [vmem:[%s3658_s13 + $0x20] sm:$0xff] }
 0x248   : > { %1979 = vperm.xlu1 %2685, %v1841_v5   ;;  %v1828_v63 = vmul.f32 %v1796_v24, %v3650_v53 }
 0x249   : > { %v1752_v47 = vadd.f32 1e-05, %v1736_v50  ;;  %v1695_v45 = vpop.xlane.xlu0 %1694  ;;  %v1827_v16 = vmul.f32 %v1795_v15, %v3647_v14 }
 0x24a   : > { %v3691_v39 = vpop.xlane.xlu1 %1617  ;;  %v1844_v51 = vsub.f32 %v1812_v62, %v1828_v63  ;;  %v1737_v48 = vsub.f32 %v1695_v45, %v1721_v44 }
 0x24b   : > { %2702 = vrsqrt.f32 %v1752_v47  ;;  %v1722_v58 = vmul.f32 %v3691_v39, %v3691_v39  ;;  %v1843_v14 = vsub.f32 %v1811_v21, %v1827_v16  ;;  %v1781_v47 = vld [vmem:[%s3645_s10 + $0x30] sm:$0xff] }
 0x24c   : > { %1994 = vperm.xlu0 %2684, %v1844_v51   ;;  %1877 = vperm.xlu1 %2685, %v1795_v15   ;;  %2704 = vrsqrt.f32 %v1751_v1  ;;  %v1753_v15 = vadd.f32 1e-05, %v1737_v48 }
 0x24d   : > { %v2699_v2 = vpop.eup %2698  ;;  %v3696_v53 = vpop.xlane.xlu0 %1620 }
 0x24e   : > { %v1698_v31 = vpop.xlane.xlu1 %1697  ;;  %v1798_v49 = vmul.f32 %v2699_v2, %v1782_v56  ;;  %v2701_v63 = vpop.eup %2700  ;;  %v1723_v2 = vmul.f32 %v3696_v53, %v3696_v53 }
 0x24f   : > { %v1738_v27 = vsub.f32 %v1698_v31, %v1722_v58  ;;  %v1797_v56 = vmul.f32 %v2701_v63, %v1781_v47  ;;  %v1816_v58 = vld [vmem:[%s3658_s13 + $0x48] sm:$0xff] }
 0x250   : > { %1882 = vperm.xlu1 %2685, %v1796_v24   ;;  %v1830_v5 = vmul.f32 %v1798_v49, %v3666_v26 }
 0x251   : > { %v1754_v4 = vadd.f32 1e-05, %v1738_v27  ;;  %v1701_v50 = vpop.xlane.xlu0 %1700 }
 0x252   : > { %v3704_v62 = vpop.xlane.xlu1 %1623  ;;  %v1846_v59 = vsub.f32 %v1814_v61, %v1830_v5  ;;  %v1739_v44 = vsub.f32 %v1701_v50, %v1723_v2  ;;  %v1829_v5 = vmul.f32 %v1797_v56, %v3660_v20 }
 0x253   : > { %2706 = vrsqrt.f32 %v1754_v4  ;;  %v1724_v26 = vmul.f32 %v3704_v62, %v3704_v62  ;;  %v1786_v4 = vld [vmem:[%s3645_s10 + $0x58] sm:$0xff] }
 0x254   : > { %2004 = vperm.xlu0 %2684, %v1846_v59   ;;  %1989 = vperm.xlu1 %2685, %v1843_v14   ;;  %2708 = vrsqrt.f32 %v1753_v15  ;;  %v1813_v59 = vld [vmem:[%s3658_s13 + $0x30] sm:$0xff]  ;;  %v1783_v14 = vld [vmem:[%s3645_s10 + $0x40] sm:$0xff] }
 0x255   : > { %v2703_v51 = vpop.eup %2702  ;;  %v3713_v31 = vpop.xlane.xlu0 %1626  ;;  %v1845_v50 = vsub.f32 %v1813_v59, %v1829_v5 }
 0x256   : > { %v1704_v24 = vpop.xlane.xlu1 %1703  ;;  %v1800_v45 = vmul.f32 %v2703_v51, %v1784_v55  ;;  %v2705_v48 = vpop.eup %2704  ;;  %v1755_v55 = vadd.f32 1e-05, %v1739_v44  ;;  %v1725_v20 = vmul.f32 %v3713_v31, %v3713_v31  ;;  %v1788_v44 = vld [vmem:[%s3645_s10 + $0x68] sm:$0xff] }
 0x257   : > { %v1740_v1 = vsub.f32 %v1704_v24, %v1724_v26  ;;  %v1799_v26 = vmul.f32 %v2705_v48, %v1783_v14  ;;  %v1820_v14 = vld [vmem:[%s3658_s13 + $0x68] sm:$0xff] }
 0x258   : > { %1902 = vperm.xlu0 %2684, %v1800_v45   ;;  %1887 = vperm.xlu1 %2685, %v1797_v56   ;;  %v1832_v16 = vmul.f32 %v1800_v45, %v3677_v7  ;;  %v1818_v45 = vld [vmem:[%s3658_s13 + $0x58] sm:$0xff] }
 0x259   : > { %v1756_v27 = vadd.f32 1e-05, %v1740_v1  ;;  %v1707_v51 = vpop.xlane.xlu0 %1706 }
 0x25a   : > { %v1630_v61 = vpop.xlane.xlu1 %1629  ;;  %v1848_v21 = vsub.f32 %v1816_v58, %v1832_v16  ;;  %v1741_v56 = vsub.f32 %v1707_v51, %v1725_v20  ;;  %v1831_v58 = vmul.f32 %v1799_v26, %v3672_v41  ;;  %v1817_v51 = vld [vmem:[%s3658_s13 + $0x50] sm:$0xff] }
 0x25b   : > { %2710 = vrsqrt.f32 %v1756_v27  ;;  %v1726_v47 = vmul.f32 %v1630_v61, %v1630_v61  ;;  %v1815_v27 = vld [vmem:[%s3658_s13 + $0x40] sm:$0xff] }
 0x25c   : > { %2014 = vperm.xlu0 %2684, %v1848_v21   ;;  %1892 = vperm.xlu1 %2685, %v1798_v49   ;;  %2712 = vrsqrt.f32 %v1755_v55  ;;  %v1785_v21 = vld [vmem:[%s3645_s10 + $0x50] sm:$0xff]  ;;  %v1757_v48 = vadd.f32 1e-05, %v1741_v56 }
 0x25d   : > { %v2707_v63 = vpop.eup %2706 }
 0x25e   : > { %v1710_v7 = vpop.xlane.xlu1 %1709  ;;  %v1802_v15 = vmul.f32 %v2707_v63, %v1786_v4  ;;  %v2709_v16 = vpop.eup %2708  ;;  %v1847_v4 = vsub.f32 %v1815_v27, %v1831_v58  ;;  %v1821_v27 = vld [vmem:[%s3658_s13 + $0x70] sm:$0xff] }
 0x25f   : > { %v1742_v24 = vsub.f32 %v1710_v7, %v1726_v47  ;;  %v1801_v59 = vmul.f32 %v2709_v16, %v1785_v21  ;;  %v1790_v7 = vld [vmem:[%s3645_s10 + $0x78] sm:$0xff] }
 0x260   : > { %1912 = vperm.xlu0 %2684, %v1802_v15   ;;  %1999 = vperm.xlu1 %2685, %v1845_v50   ;;  %v1834_v49 = vmul.f32 %v1802_v15, %v3691_v39  ;;  %v1787_v15 = vld [vmem:[%s3645_s10 + $0x60] sm:$0xff] }
 0x261   : > { %v1758_v2 = vadd.f32 1e-05, %v1742_v24  ;;  %v1833_v55 = vmul.f32 %v1801_v59, %v3684_v35 }
 0x262   : > { %v1850_v1 = vsub.f32 %v1818_v45, %v1834_v49  ;;  %v1822_v45 = vld [vmem:[%s3658_s13 + $0x78] sm:$0xff] }
 0x263   : > { %2714 = vrsqrt.f32 %v1758_v2  ;;  %v1819_v2 = vld [vmem:[%s3658_s13 + $0x60] sm:$0xff] }
 0x264   : > { %2024 = vperm.xlu0 %2684, %v1850_v1   ;;  %1897 = vperm.xlu1 %2685, %v1799_v26   ;;  %2716 = vrsqrt.f32 %v1757_v48  ;;  %v1849_v26 = vsub.f32 %v1817_v51, %v1833_v55  ;;  %v1789_v1 = vld [vmem:[%s3645_s10 + $0x70] sm:$0xff] }
 0x265   : > { %v2711_v5 = vpop.eup %2710 }
 0x266   : > { %v1804_v39 = vmul.f32 %v2711_v5, %v1788_v44  ;;  %v2713_v47 = vpop.eup %2712 }
 0x267   : > { %v1803_v24 = vmul.f32 %v2713_v47, %v1787_v15 }
 0x268   : > { %1922 = vperm.xlu0 %2684, %v1804_v39   ;;  %2009 = vperm.xlu1 %2685, %v1847_v4   ;;  %v1836_v41 = vmul.f32 %v1804_v39, %v3704_v62 }
 0x269   : > { %v1835_v35 = vmul.f32 %v1803_v24, %v3696_v53 }
 0x26a   : > { %v1852_v63 = vsub.f32 %v1820_v14, %v1836_v41 }
 0x26b   : > { %v1851_v58 = vsub.f32 %v1819_v2, %v1835_v35 }
 0x26c   : > { %2034 = vperm.xlu0 %2684, %v1852_v63   ;;  %1907 = vperm.xlu1 %2685, %v1801_v59  }
 0x26d   : > { %v2715_v50 = vpop.eup %2714 }
 0x26e   : > { %v1806_v20 = vmul.f32 %v2715_v50, %v1790_v7  ;;  %v2717_v56 = vpop.eup %2716 }
 0x26f   : > { %v1805_v16 = vmul.f32 %v2717_v56, %v1789_v1 }
 0x270   : > { %2019 = vperm.xlu1 %2685, %v1849_v26   ;;  %1932 = vperm.xlu0 %2684, %v1806_v20   ;;  %v1838_v62 = vmul.f32 %v1806_v20, %v1630_v61 }
 0x271   : > { %v1837_v44 = vmul.f32 %v1805_v16, %v3713_v31 }
 0x272   : > { %v1854_v49 = vsub.f32 %v1822_v45, %v1838_v62 }
 0x273   : > { %v1853_v21 = vsub.f32 %v1821_v27, %v1837_v44 }
 0x274   : > { %1917 = vperm.xlu1 %2685, %v1803_v24   ;;  %2044 = vperm.xlu0 %2684, %v1854_v49  }
 0x278   : > { %2029 = vperm.xlu1 %2685, %v1851_v58  }
 0x27c   : > { %1927 = vperm.xlu1 %2685, %v1805_v16  }
 0x280   : > { %2039 = vperm.xlu1 %2685, %v1853_v21  }
 0x2b1   : > { %v1858_v5 = vpop.permute.xlu0 %1857 }
 0x2b2   : > { %v1935_v53 = vmul.f32 %v3412_v22, %v1858_v5  ;;  %v1936_v48 = vmul.f32 %v3416_v8, %v1858_v5 }
 0x2b7   : > { %v1863_v61 = vpop.permute.xlu1 %1862 }
 0x2b8   : > { %v1937_v39 = vmul.f32 %v3424_v37, %v1863_v61  ;;  %v1938_v4 = vmul.f32 %v3428_v40, %v1863_v61 }
 0x2bb   : > { %v1975_v31 = vpop.permute.xlu0 %1974  ;;  %v1970_v59 = vpop.permute.xlu1 %1969 }
 0x2bc   : > { %v2049_v14 = vadd.f32 %v1975_v31, %v1937_v39  ;;  %v2050_v41 = vadd.f32 %v1975_v31, %v1938_v4  ;;  %v2047_v22 = vadd.f32 %v1970_v59, %v1935_v53  ;;  %v2048_v8 = vadd.f32 %v1970_v59, %v1936_v48 }
 0x2be   : > { %2081 = vst [vmem:[%s3748_s17 + $0x10] sm:$0xff] %v2049_v14  ;;  %2082 = vst [vmem:[%s3748_s17 + $0x18] sm:$0xff] %v2050_v41 }
 0x2bf   : > { %2079 = vst [vmem:[%s3748_s17] sm:$0xff] %v2047_v22  ;;  %2080 = vst [vmem:[%s3748_s17 + $0x8] sm:$0xff] %v2048_v8  ;;  %v1868_v37 = vpop.permute.xlu1 %1867 }
 0x2c0   : > { %v1939_v51 = vmul.f32 %v3438_v19, %v1868_v37  ;;  %v1940_v7 = vmul.f32 %v3444_v6, %v1868_v37 }
 0x2c3   : > { %v1873_v40 = vpop.permute.xlu1 %1872  ;;  %v1985_v47 = vpop.permute.xlu0 %1984 }
 0x2c4   : > { %v1941_v63 = vmul.f32 %v3454_v18, %v1873_v40  ;;  %v1942_v55 = vmul.f32 %v3459_v34, %v1873_v40 }
 0x2c6   : > { %v2053_v15 = vadd.f32 %v1985_v47, %v1941_v63  ;;  %v2054_v50 = vadd.f32 %v1985_v47, %v1942_v55 }
 0x2c7   : > { %v1980_v26 = vpop.permute.xlu1 %1979 }
 0x2c8   : > { %2085 = vst [vmem:[%s3748_s17 + $0x30] sm:$0xff] %v2053_v15  ;;  %2086 = vst [vmem:[%s3748_s17 + $0x38] sm:$0xff] %v2054_v50  ;;  %v2051_v20 = vadd.f32 %v1980_v26, %v1939_v51  ;;  %v2052_v24 = vadd.f32 %v1980_v26, %v1940_v7 }
 0x2ca   : > { %2083 = vst [vmem:[%s3748_s17 + $0x20] sm:$0xff] %v2051_v20  ;;  %2084 = vst [vmem:[%s3748_s17 + $0x28] sm:$0xff] %v2052_v24 }
 0x2cb   : > { %v1878_v18 = vpop.permute.xlu1 %1877  ;;  %v1995_v34 = vpop.permute.xlu0 %1994 }
 0x2cc   : > { %v1943_v62 = vmul.f32 %v3471_v38, %v1878_v18  ;;  %v1944_v49 = vmul.f32 %v3477_v12, %v1878_v18 }
 0x2cf   : > { %v1883_v45 = vpop.permute.xlu1 %1882 }
 0x2d0   : > { %v1945_v19 = vmul.f32 %v3489_v57, %v1883_v45  ;;  %v1946_v6 = vmul.f32 %v3495_v11, %v1883_v45 }
 0x2d2   : > { %v2057_v35 = vadd.f32 %v1995_v34, %v1945_v19  ;;  %v2058_v56 = vadd.f32 %v1995_v34, %v1946_v6 }
 0x2d3   : > { %v2005_v2 = vpop.permute.xlu0 %2004  ;;  %v1990_v1 = vpop.permute.xlu1 %1989 }
 0x2d4   : > { %2089 = vst [vmem:[%s3748_s17 + $0x50] sm:$0xff] %v2057_v35  ;;  %2090 = vst [vmem:[%s3748_s17 + $0x58] sm:$0xff] %v2058_v56  ;;  %v2055_v58 = vadd.f32 %v1990_v1, %v1943_v62  ;;  %v2056_v16 = vadd.f32 %v1990_v1, %v1944_v49 }
 0x2d6   : > { %2087 = vst [vmem:[%s3748_s17 + $0x40] sm:$0xff] %v2055_v58  ;;  %2088 = vst [vmem:[%s3748_s17 + $0x48] sm:$0xff] %v2056_v16 }
 0x2d7   : > { %v1903_v44 = vpop.permute.xlu0 %1902  ;;  %v1888_v57 = vpop.permute.xlu1 %1887 }
 0x2d8   : > { %v1953_v11 = vmul.f32 %v3553_v32, %v1903_v44  ;;  %v1954_v38 = vmul.f32 %v3555_v23, %v1903_v44  ;;  %v1947_v48 = vmul.f32 %v3507_v25, %v1888_v57  ;;  %v1948_v39 = vmul.f32 %v3513_v28, %v1888_v57 }
 0x2db   : > { %v2015_v12 = vpop.permute.xlu0 %2014  ;;  %v1893_v27 = vpop.permute.xlu1 %1892 }
 0x2dc   : > { %v2065_v21 = vadd.f32 %v2015_v12, %v1953_v11  ;;  %v2066_v5 = vadd.f32 %v2015_v12, %v1954_v38  ;;  %v1949_v61 = vmul.f32 %v3525_v9, %v1893_v27  ;;  %v1950_v53 = vmul.f32 %v3531_v46, %v1893_v27 }
 0x2de   : > { %2097 = vst [vmem:[%s3748_s17 + $0x90] sm:$0xff] %v2065_v21  ;;  %2098 = vst [vmem:[%s3748_s17 + $0x98] sm:$0xff] %v2066_v5  ;;  %v2061_v32 = vadd.f32 %v2005_v2, %v1949_v61  ;;  %v2062_v23 = vadd.f32 %v2005_v2, %v1950_v53 }
 0x2df   : > { %v1913_v4 = vpop.permute.xlu0 %1912  ;;  %v2000_v31 = vpop.permute.xlu1 %1999 }
 0x2e0   : > { %2093 = vst [vmem:[%s3748_s17 + $0x70] sm:$0xff] %v2061_v32  ;;  %2094 = vst [vmem:[%s3748_s17 + $0x78] sm:$0xff] %v2062_v23  ;;  %v2059_v59 = vadd.f32 %v2000_v31, %v1947_v48  ;;  %v2060_v9 = vadd.f32 %v2000_v31, %v1948_v39  ;;  %v1957_v14 = vmul.f32 %v3577_v29, %v1913_v4 }
 0x2e1   : > { %v1958_v46 = vmul.f32 %v3579_v10, %v1913_v4 }
 0x2e2   : > { %2091 = vst [vmem:[%s3748_s17 + $0x60] sm:$0xff] %v2059_v59  ;;  %2092 = vst [vmem:[%s3748_s17 + $0x68] sm:$0xff] %v2060_v9 }
 0x2e3   : > { %v2025_v25 = vpop.permute.xlu0 %2024  ;;  %v1898_v28 = vpop.permute.xlu1 %1897 }
 0x2e4   : > { %v2069_v41 = vadd.f32 %v2025_v25, %v1957_v14  ;;  %v2070_v22 = vadd.f32 %v2025_v25, %v1958_v46  ;;  %v1951_v8 = vmul.f32 %v3541_v36, %v1898_v28  ;;  %v1952_v37 = vmul.f32 %v3543_v30, %v1898_v28 }
 0x2e6   : > { %2101 = vst [vmem:[%s3748_s17 + $0xb0] sm:$0xff] %v2069_v41  ;;  %2102 = vst [vmem:[%s3748_s17 + $0xb8] sm:$0xff] %v2070_v22 }
 0x2e7   : > { %v1923_v40 = vpop.permute.xlu0 %1922  ;;  %v2010_v29 = vpop.permute.xlu1 %2009 }
 0x2e8   : > { %v2063_v63 = vadd.f32 %v2010_v29, %v1951_v8  ;;  %v2064_v10 = vadd.f32 %v2010_v29, %v1952_v37  ;;  %v1961_v55 = vmul.f32 %v3601_v60, %v1923_v40  ;;  %v1962_v47 = vmul.f32 %v3603_v33, %v1923_v40 }
 0x2ea   : > { %2095 = vst [vmem:[%s3748_s17 + $0x80] sm:$0xff] %v2063_v63  ;;  %2096 = vst [vmem:[%s3748_s17 + $0x88] sm:$0xff] %v2064_v10 }
 0x2eb   : > { %v2035_v51 = vpop.permute.xlu0 %2034  ;;  %v1908_v7 = vpop.permute.xlu1 %1907 }
 0x2ec   : > { %v2073_v15 = vadd.f32 %v2035_v51, %v1961_v55  ;;  %v2074_v50 = vadd.f32 %v2035_v51, %v1962_v47  ;;  %v1955_v36 = vmul.f32 %v3565_v43, %v1908_v7  ;;  %v1956_v30 = vmul.f32 %v3567_v54, %v1908_v7 }
 0x2ee   : > { %2105 = vst [vmem:[%s3748_s17 + $0xd0] sm:$0xff] %v2073_v15  ;;  %2106 = vst [vmem:[%s3748_s17 + $0xd8] sm:$0xff] %v2074_v50 }
 0x2ef   : > { %v1933_v26 = vpop.permute.xlu0 %1932  ;;  %v2020_v60 = vpop.permute.xlu1 %2019 }
 0x2f0   : > { %v2067_v20 = vadd.f32 %v2020_v60, %v1955_v36  ;;  %v2068_v33 = vadd.f32 %v2020_v60, %v1956_v30  ;;  %v1965_v24 = vmul.f32 %v3625_v17, %v1933_v26  ;;  %v1966_v18 = vmul.f32 %v3627_v0, %v1933_v26 }
 0x2f2   : > { %2099 = vst [vmem:[%s3748_s17 + $0xa0] sm:$0xff] %v2067_v20  ;;  %2100 = vst [vmem:[%s3748_s17 + $0xa8] sm:$0xff] %v2068_v33 }
 0x2f3   : > { %v2045_v34 = vpop.permute.xlu0 %2044  ;;  %v1918_v45 = vpop.permute.xlu1 %1917 }
 0x2f4   : > { %v2077_v19 = vadd.f32 %v2045_v34, %v1965_v24  ;;  %v2078_v6 = vadd.f32 %v2045_v34, %v1966_v18  ;;  %v1959_v43 = vmul.f32 %v3589_v3, %v1918_v45  ;;  %v1960_v54 = vmul.f32 %v3591_v52, %v1918_v45 }
 0x2f6   : > { %2109 = vst [vmem:[%s3748_s17 + $0xf0] sm:$0xff] %v2077_v19  ;;  %2110 = vst [vmem:[%s3748_s17 + $0xf8] sm:$0xff] %v2078_v6 }
 0x2f7   : > { %v2030_v62 = vpop.permute.xlu1 %2029 }
 0x2f8   : > { %v2071_v49 = vadd.f32 %v2030_v62, %v1959_v43  ;;  %v2072_v17 = vadd.f32 %v2030_v62, %v1960_v54 }
 0x2fa   : > { %2103 = vst [vmem:[%s3748_s17 + $0xc0] sm:$0xff] %v2071_v49  ;;  %2104 = vst [vmem:[%s3748_s17 + $0xc8] sm:$0xff] %v2072_v17 }
 0x2fb   : > { %v1928_v0 = vpop.permute.xlu1 %1927 }
 0x2fc   : > { %v1963_v35 = vmul.f32 %v3613_v13, %v1928_v0  ;;  %v1964_v56 = vmul.f32 %v3615_v42, %v1928_v0 }
 0x2ff   : > { %v2040_v2 = vpop.permute.xlu1 %2039 }
 0x300   : > { %v2075_v1 = vadd.f32 %v2040_v2, %v1963_v35  ;;  %v2076_v58 = vadd.f32 %v2040_v2, %v1964_v56 }
 0x302   : > { %2107 = vst [vmem:[%s3748_s17 + $0xe0] sm:$0xff] %v2075_v1  ;;  %2108 = vst [vmem:[%s3748_s17 + $0xe8] sm:$0xff] %v2076_v58 }
 0x303 PF: > { %s15_s18 = sadd.s32 1, %s2724_s18  }
 0x304   : > { %p12_p5 = scmp.ge.s32.totalorder %s15_s18, 4  }
 0x306   :  { %14 = sbr.rel (!%p12_p5) target bundleno = 1 (0x1), region = 79 }

</bundles_post_ra>
